<compile_context>
chip_gen: v7x
topology: tpu7x:2x2x1
jax: 0.10.0
libtpu: 0.0.40
codegen_flags: <defaults>
</compile_context>

<pallas_src>
import functools

import jax
import jax.numpy as jnp
from jax.experimental import pallas as pl
from jax.experimental.pallas import tpu as pltpu


def _round_up(v, m):
    return ((v + m - 1) // m) * m


# ----------------------------------------------------------------------------
# Fused kernel: per grid step = one sample, whole image (lane-flattened H*W)
# ----------------------------------------------------------------------------
def _coupling_fused_kernel(x_ref, w1_ref, b1_ref, w2_ref, b2_ref, w3_ref,
                           b3_ref, y_ref, ld_ref, xbpad_ref, h2pad_ref, *,
                           ca, h, w, off, coupling_bias):
    hw = h * w

    # Lane masks for the horizontally shifted taps: the flattened H*W lane axis
    # wraps across image rows, so kw=0 taps are invalid at column 0 and kw=2
    # taps at column W-1.  Vertical out-of-range reads land in the zero rows of
    # the padded scratch buffers and need no mask.
    col = jax.lax.broadcasted_iota(jnp.int32, (1, hw), 1) % w
    mask_l = (col != 0).astype(jnp.float32)
    mask_r = (col != (w - 1)).astype(jnp.float32)

    def conv3x3(pad_ref, wtap_ref):
        # pad_ref: (Cin, PADLEN) bf16, image data at lane offset `off`, zeros
        #          elsewhere (one zero row above/below the image).
        # wtap_ref: (9, Cout, Cin) bf16, tap index = kh*3 + kw.
        # returns (Cout, hw) f32.
        acc = None
        for kh in range(3):
            for kw in range(3):
                start = off + (kh - 1) * w + (kw - 1)
                sl = pad_ref[:, start:start + hw]                  # (Cin, hw)
                c = jnp.dot(wtap_ref[kh * 3 + kw], sl,
                            preferred_element_type=jnp.float32)    # (Cout, hw)
                if kw == 0:
                    c = c * mask_l
                elif kw == 2:
                    c = c * mask_r
                acc = c if acc is None else acc + c
        return acc

    # ---- stage xb (lower half of the channels) into the padded buffer -------
    xbpad_ref[...] = jnp.zeros_like(xbpad_ref)
    xbpad_ref[:, off:off + hw] = x_ref[0, ca:, :].astype(jnp.bfloat16)

    # ---- conv3x3 -> ReLU ------------------------------------------------------
    h1 = jnp.maximum(conv3x3(xbpad_ref, w1_ref) + b1_ref[...], 0.0)

    # ---- conv1x1 -> ReLU (plain GEMM, K = hidden) -----------------------------
    h2 = jnp.dot(w2_ref[...], h1.astype(jnp.bfloat16),
                 preferred_element_type=jnp.float32)
    h2 = jnp.maximum(h2 + b2_ref[...], 0.0)

    # ---- final conv3x3 (s and t produced by one merged GEMM set) --------------
    h2pad_ref[...] = jnp.zeros_like(h2pad_ref)
    h2pad_ref[:, off:off + hw] = h2.astype(jnp.bfloat16)
    st = conv3x3(h2pad_ref, w3_ref) + b3_ref[...]          # (2*Ca, hw) f32

    # ---- affine coupling + per-sample logdet partial --------------------------
    s = jax.nn.sigmoid(st[:ca, :] + 2.0) + coupling_bias   # (Ca, hw) f32
    t = st[ca:, :]
    xa = x_ref[0, :ca, :]
    y_ref[0, :ca, :] = (s * xa + t).astype(y_ref.dtype)    # ya
    y_ref[0, ca:, :] = x_ref[0, ca:, :]                    # xb passes through
    ld_ref[...] = jnp.sum(jnp.log(s), keepdims=True).reshape(1, 1, 1)


# ----------------------------------------------------------------------------
# CouplingLayer forward (affine, not reversed)
# ----------------------------------------------------------------------------
def coupling_layer_forward(x, logdet, packed, channels, coupling_bias):
    # x: (N, C, H, W) float32, logdet: (N,) float32
    n, c, h, w = x.shape
    ca = channels // 2
    cb = c - ca
    hw = h * w
    hidden = packed["w2"].shape[0]
    c2 = packed["w3"].shape[1]            # 2 * ca

    # Padded-buffer geometry: image placed at lane offset `off` (>= W+1, lane
    # aligned for the store), one zero row of slack on each side.
    off = _round_up(w + 1, 128)
    padlen = _round_up(off + hw + w + 1, 128)

    x_flat = x.reshape(n, c, hw).astype(jnp.float32)

    kernel = functools.partial(_coupling_fused_kernel, ca=ca, h=h, w=w,
                               off=off, coupling_bias=coupling_bias)

    y_flat, ld_part = pl.pallas_call(
        kernel,
        out_shape=(jax.ShapeDtypeStruct((n, c, hw), jnp.float32),
                   jax.ShapeDtypeStruct((n, 1, 1), jnp.float32)),
        grid=(n,),
        in_specs=[
            pl.BlockSpec((1, c, hw), lambda i: (i, 0, 0)),         # x (xa + xb)
            pl.BlockSpec((9, hidden, cb), lambda i: (0, 0, 0)),    # w1 taps
            pl.BlockSpec((hidden, 1), lambda i: (0, 0)),           # b1
            pl.BlockSpec((hidden, hidden), lambda i: (0, 0)),      # w2
            pl.BlockSpec((hidden, 1), lambda i: (0, 0)),           # b2
            pl.BlockSpec((9, c2, hidden), lambda i: (0, 0, 0)),    # w3 taps
            pl.BlockSpec((c2, 1), lambda i: (0, 0)),               # b3
        ],
        out_specs=(
            pl.BlockSpec((1, c, hw), lambda i: (i, 0, 0)),         # y
            pl.BlockSpec((1, 1, 1), lambda i: (i, 0, 0)),          # logdet part
        ),
        scratch_shapes=[
            pltpu.VMEM((cb, padlen), jnp.bfloat16),                # padded xb
            pltpu.VMEM((hidden, padlen), jnp.bfloat16),            # padded h2
        ],
        compiler_params=pltpu.CompilerParams(
            dimension_semantics=("parallel",)),
    )(x_flat, packed["w1"], packed["b1"], packed["w2"], packed["b2"],
      packed["w3"], packed["b3"])

    y = y_flat.reshape(n, c, h, w)
    return y, logdet + ld_part.reshape(n)


# ----------------------------------------------------------------------------
# Parameter packing (per-tap GEMM layouts, bf16 weights, s/t de-interleave)
# ----------------------------------------------------------------------------
def pack_params(params):
    hidden = params["w1"].shape[0]
    c_out = params["w3"].shape[0]
    ca = c_out // 2
    bf = jnp.bfloat16
    # conv3x3 #1: (hidden, Cin, 3, 3) -> (9, hidden, Cin), tap = kh*3 + kw
    w1 = jnp.transpose(params["w1"], (2, 3, 0, 1)).reshape(9, hidden, -1)
    # conv3x3 #3: reorder output channels so rows [0:Ca] = s, [Ca:2Ca] = t
    w3r = jnp.concatenate([params["w3"][0::2], params["w3"][1::2]], axis=0)
    b3r = jnp.concatenate([params["b3"][0::2], params["b3"][1::2]], axis=0)
    w3 = jnp.transpose(w3r, (2, 3, 0, 1)).reshape(9, 2 * ca, hidden)
    return {
        "w1": w1.astype(bf),                                       # (9, hidden, Cin)
        "b1": params["b1"].reshape(hidden, 1).astype(jnp.float32),
        "w2": params["w2"].reshape(hidden, hidden).astype(bf),     # (hidden, hidden)
        "b2": params["b2"].reshape(hidden, 1).astype(jnp.float32),
        "w3": w3.astype(bf),                                       # (9, 2Ca, hidden)
        "b3": b3r.reshape(2 * ca, 1).astype(jnp.float32),
    }


def init_params(key, c_in, hidden, c_out):
    ks = jax.random.split(key, 6)
    scale = 0.05
    return {
        "w1": scale * jax.random.normal(ks[0], (hidden, c_in, 3, 3), jnp.float32),
        "b1": scale * jax.random.normal(ks[1], (hidden,), jnp.float32),
        "w2": scale * jax.random.normal(ks[2], (hidden, hidden, 1, 1), jnp.float32),
        "b2": scale * jax.random.normal(ks[3], (hidden,), jnp.float32),
        "w3": scale * jax.random.normal(ks[4], (c_out, hidden, 3, 3), jnp.float32),
        "b3": scale * jax.random.normal(ks[5], (c_out,), jnp.float32),
    }


# ----------------------------------------------------------------------------
# Pure-JAX reference (mirrors the bf16 operand rounding of the MXU path)
# ----------------------------------------------------------------------------
def reference_forward(x, logdet, params, channels, coupling_bias):
    n, c, h, w = x.shape
    ca = channels // 2
    q = lambda v: v.astype(jnp.bfloat16).astype(jnp.float32)
    xa, xb = x[:, :ca], x[:, ca:]

    def conv(x_, wgt, b, pad):
        o = jax.lax.conv_general_dilated(
            q(x_), q(wgt), window_strides=(1, 1),
            padding=[(pad, pad), (pad, pad)],
            dimension_numbers=("NCHW", "OIHW", "NCHW"),
            precision=jax.lax.Precision.HIGHEST)
        return o + b.reshape(1, -1, 1, 1)

    hh = jax.nn.relu(conv(xb, params["w1"], params["b1"], 1))
    hh = jax.nn.relu(conv(hh, params["w2"], params["b2"], 0))
    s_and_t = conv(hh, params["w3"], params["b3"], 1)
    s_raw, t = s_and_t[:, 0::2], s_and_t[:, 1::2]
    s = jax.nn.sigmoid(s_raw + 2.0) + coupling_bias
    ya = s * xa + t
    y = jnp.concatenate([ya, xb], axis=1)
    ld = logdet + jnp.log(s).reshape(n, -1).sum(-1)
    return y, ld


if __name__ == "__main__":
    # Small shapes consistent with the module: batch=2, channels=4, 16x16.
    N, C, H, W = 2, 4, 16, 16
    HIDDEN = 32
    COUPLING_BIAS = 1e-4

    key = jax.random.PRNGKey(0)
    kx, kld, kp = jax.random.split(key, 3)
    x = jax.random.normal(kx, (N, C, H, W), jnp.float32)
    logdet = jax.random.normal(kld, (N,), jnp.float32)
    params = init_params(kp, C // 2, HIDDEN, C)   # affine: out channels == C
    packed = pack_params(params)

    fwd = jax.jit(functools.partial(coupling_layer_forward,
                                    channels=C, coupling_bias=COUPLING_BIAS))
    y, logdet_out = fwd(x, logdet, packed)
    y = jax.block_until_ready(y)
    logdet_out = jax.block_until_ready(logdet_out)

    # sanity check against a pure-JAX reference with matching bf16 rounding
    y_ref, ld_ref = reference_forward(x, logdet, params, C, COUPLING_BIAS)
    assert jnp.allclose(y, y_ref, atol=2e-2, rtol=2e-2), "y mismatch"
    assert jnp.allclose(logdet_out, ld_ref, atol=5e-2, rtol=2e-2), "logdet mismatch"
    # mirrors the module's nan/inf asserts
    assert not bool(jnp.isnan(y).any()) and not bool(jnp.isinf(y).any())
    assert not bool(jnp.isnan(logdet_out).any())

    print("KERNEL_OK")
</pallas_src>

<mosaic_0001>
module attributes {stable_mosaic.version = 11 : i64} {
  func.func @_coupling_fused_kernel(%arg0: i32, %arg1: memref<1x4x256xf32, #tpu.memory_space<vmem>>, %arg2: memref<9x32x2xbf16, #tpu.memory_space<vmem>>, %arg3: memref<32x1xf32, #tpu.memory_space<vmem>>, %arg4: memref<32x32xbf16, #tpu.memory_space<vmem>>, %arg5: memref<32x1xf32, #tpu.memory_space<vmem>>, %arg6: memref<9x4x32xbf16, #tpu.memory_space<vmem>>, %arg7: memref<4x1xf32, #tpu.memory_space<vmem>>, %arg8: memref<1x4x256xf32, #tpu.memory_space<vmem>>, %arg9: memref<1x1x1xf32, #tpu.memory_space<vmem>>, %arg10: memref<2x512xbf16, #tpu.memory_space<vmem>>, %arg11: memref<32x512xbf16, #tpu.memory_space<vmem>>) attributes {dimension_semantics = [#tpu.dimension_semantics<parallel>], iteration_bounds = array<i64: 2>, scalar_prefetch = 0 : i64, scratch_operands = 2 : i64, tpu.core_type = #tpu.core_type<tc>, window_params = [{transform_indices = @transform_0, window_bounds = array<i64: 1, 4, 256>}, {pipeline_mode = #tpu.pipeline_mode<synchronous>, transform_indices = @transform_1, window_bounds = array<i64: 9, 32, 2>}, {pipeline_mode = #tpu.pipeline_mode<synchronous>, transform_indices = @transform_2, window_bounds = array<i64: 32, 1>}, {pipeline_mode = #tpu.pipeline_mode<synchronous>, transform_indices = @transform_3, window_bounds = array<i64: 32, 32>}, {pipeline_mode = #tpu.pipeline_mode<synchronous>, transform_indices = @transform_4, window_bounds = array<i64: 32, 1>}, {pipeline_mode = #tpu.pipeline_mode<synchronous>, transform_indices = @transform_5, window_bounds = array<i64: 9, 4, 32>}, {pipeline_mode = #tpu.pipeline_mode<synchronous>, transform_indices = @transform_6, window_bounds = array<i64: 4, 1>}, {transform_indices = @transform_7, window_bounds = array<i64: 1, 4, 256>}, {transform_indices = @transform_8, window_bounds = array<i64: 1, 1, 1>}]} {
    %0 = tpu.iota {dimensions = array<i32: 1>} : vector<1x256xi32>
    %c16_i32 = arith.constant 16 : i32
    %c0_i32 = arith.constant 0 : i32
    %1 = arith.cmpi eq, %c16_i32, %c0_i32 : i32
    %c1_i32 = arith.constant 1 : i32
    %2 = arith.select %1, %c1_i32, %c16_i32 : i32
    %3 = vector.broadcast %2 : i32 to vector<1x256xi32>
    %4 = arith.remsi %0, %3 : vector<1x256xi32>
    %c0_i32_0 = arith.constant 0 : i32
    %5 = vector.broadcast %c0_i32_0 : i32 to vector<1x256xi32>
    %6 = arith.cmpi ne, %4, %5 : vector<1x256xi32>
    %c0_i32_1 = arith.constant 0 : i32
    %7 = vector.broadcast %c0_i32_1 : i32 to vector<1x256xi32>
    %8 = arith.cmpi slt, %4, %7 : vector<1x256xi32>
    %c0_i32_2 = arith.constant 0 : i32
    %9 = arith.cmpi slt, %2, %c0_i32_2 : i32
    %10 = vector.broadcast %9 : i1 to vector<1x256xi1>
    %11 = vector.broadcast %10 : vector<1x256xi1> to vector<1x256xi1>
    %12 = arith.xori %8, %11 : vector<1x256xi1>
    %13 = arith.andi %12, %6 : vector<1x256xi1>
    %14 = vector.broadcast %2 : i32 to vector<1x256xi32>
    %15 = arith.addi %4, %14 : vector<1x256xi32>
    %16 = arith.select %13, %15, %4 : vector<1x256xi1>, vector<1x256xi32>
    %c0_i32_3 = arith.constant 0 : i32
    %17 = vector.broadcast %c0_i32_3 : i32 to vector<1x256xi32>
    %18 = arith.cmpi ne, %16, %17 : vector<1x256xi32>
    %19 = arith.extui %18 : vector<1x256xi1> to vector<1x256xi32>
    %20 = arith.sitofp %19 : vector<1x256xi32> to vector<1x256xf32>
    %c15_i32 = arith.constant 15 : i32
    %21 = vector.broadcast %c15_i32 : i32 to vector<1x256xi32>
    %22 = arith.cmpi ne, %16, %21 : vector<1x256xi32>
    %23 = arith.extui %22 : vector<1x256xi1> to vector<1x256xi32>
    %24 = arith.sitofp %23 : vector<1x256xi32> to vector<1x256xf32>
    %cst = arith.constant 0.000000e+00 : bf16
    %25 = vector.broadcast %cst : bf16 to vector<2x512xbf16>
    %c0 = arith.constant 0 : index
    %c0_4 = arith.constant 0 : index
    %26 = vector.load %arg10[%c0, %c0_4] : memref<2x512xbf16, #tpu.memory_space<vmem>>, vector<2x512xbf16>
    tpu.vector_store %arg10[%c0, %c0_4], %25 {strides = array<i32>} : memref<2x512xbf16, #tpu.memory_space<vmem>>, vector<2x512xbf16>,
    %c0_5 = arith.constant 0 : index
    %c2 = arith.constant 2 : index
    %c0_6 = arith.constant 0 : index
    %27 = vector.load %arg1[%c0_5, %c2, %c0_6] : memref<1x4x256xf32, #tpu.memory_space<vmem>>, vector<1x2x256xf32>
    %28 = vector.shape_cast %27 : vector<1x2x256xf32> to vector<2x256xf32>
    %29 = arith.truncf %28 : vector<2x256xf32> to vector<2x256xbf16>
    %c0_7 = arith.constant 0 : index
    %c128 = arith.constant 128 : index
    %30 = vector.load %arg10[%c0_7, %c128] : memref<2x512xbf16, #tpu.memory_space<vmem>>, vector<2x256xbf16>
    tpu.vector_store %arg10[%c0_7, %c128], %29 {strides = array<i32>} : memref<2x512xbf16, #tpu.memory_space<vmem>>, vector<2x256xbf16>,
    %c0_8 = arith.constant 0 : index
    %c111 = arith.constant 111 : index
    %31 = vector.load %arg10[%c0_8, %c111] : memref<2x512xbf16, #tpu.memory_space<vmem>>, vector<2x256xbf16>
    %c0_9 = arith.constant 0 : index
    %c0_10 = arith.constant 0 : index
    %c0_11 = arith.constant 0 : index
    %32 = vector.load %arg2[%c0_9, %c0_10, %c0_11] : memref<9x32x2xbf16, #tpu.memory_space<vmem>>, vector<1x32x2xbf16>
    %33 = vector.shape_cast %32 : vector<1x32x2xbf16> to vector<32x2xbf16>
    %cst_12 = arith.constant dense<0.000000e+00> : vector<32x256xf32>
    %34 = tpu.matmul %33, %31, %cst_12 {dimension_numbers = #tpu.dot_dimension_numbers<[1], [0], [0], [1], [0, 0, 1, 1], [], []>} : vector<32x2xbf16>, vector<2x256xbf16>, vector<32x256xf32> -> vector<32x256xf32>
    %35 = vector.broadcast %20 : vector<1x256xf32> to vector<32x256xf32>
    %36 = arith.mulf %34, %35 : vector<32x256xf32>
    %c0_13 = arith.constant 0 : index
    %c112 = arith.constant 112 : index
    %37 = vector.load %arg10[%c0_13, %c112] : memref<2x512xbf16, #tpu.memory_space<vmem>>, vector<2x256xbf16>
    %c1 = arith.constant 1 : index
    %c0_14 = arith.constant 0 : index
    %c0_15 = arith.constant 0 : index
    %38 = vector.load %arg2[%c1, %c0_14, %c0_15] : memref<9x32x2xbf16, #tpu.memory_space<vmem>>, vector<1x32x2xbf16>
    %39 = vector.shape_cast %38 : vector<1x32x2xbf16> to vector<32x2xbf16>
    %cst_16 = arith.constant dense<0.000000e+00> : vector<32x256xf32>
    %40 = tpu.matmul %39, %37, %cst_16 {dimension_numbers = #tpu.dot_dimension_numbers<[1], [0], [0], [1], [0, 0, 1, 1], [], []>} : vector<32x2xbf16>, vector<2x256xbf16>, vector<32x256xf32> -> vector<32x256xf32>
    %41 = arith.addf %36, %40 : vector<32x256xf32>
    %c0_17 = arith.constant 0 : index
    %c113 = arith.constant 113 : index
    %42 = vector.load %arg10[%c0_17, %c113] : memref<2x512xbf16, #tpu.memory_space<vmem>>, vector<2x256xbf16>
    %c2_18 = arith.constant 2 : index
    %c0_19 = arith.constant 0 : index
    %c0_20 = arith.constant 0 : index
    %43 = vector.load %arg2[%c2_18, %c0_19, %c0_20] : memref<9x32x2xbf16, #tpu.memory_space<vmem>>, vector<1x32x2xbf16>
    %44 = vector.shape_cast %43 : vector<1x32x2xbf16> to vector<32x2xbf16>
    %cst_21 = arith.constant dense<0.000000e+00> : vector<32x256xf32>
    %45 = tpu.matmul %44, %42, %cst_21 {dimension_numbers = #tpu.dot_dimension_numbers<[1], [0], [0], [1], [0, 0, 1, 1], [], []>} : vector<32x2xbf16>, vector<2x256xbf16>, vector<32x256xf32> -> vector<32x256xf32>
    %46 = vector.broadcast %24 : vector<1x256xf32> to vector<32x256xf32>
    %47 = arith.mulf %45, %46 : vector<32x256xf32>
    %48 = arith.addf %41, %47 : vector<32x256xf32>
    %c0_22 = arith.constant 0 : index
    %c127 = arith.constant 127 : index
    %49 = vector.load %arg10[%c0_22, %c127] : memref<2x512xbf16, #tpu.memory_space<vmem>>, vector<2x256xbf16>
    %c3 = arith.constant 3 : index
    %c0_23 = arith.constant 0 : index
    %c0_24 = arith.constant 0 : index
    %50 = vector.load %arg2[%c3, %c0_23, %c0_24] : memref<9x32x2xbf16, #tpu.memory_space<vmem>>, vector<1x32x2xbf16>
    %51 = vector.shape_cast %50 : vector<1x32x2xbf16> to vector<32x2xbf16>
    %cst_25 = arith.constant dense<0.000000e+00> : vector<32x256xf32>
    %52 = tpu.matmul %51, %49, %cst_25 {dimension_numbers = #tpu.dot_dimension_numbers<[1], [0], [0], [1], [0, 0, 1, 1], [], []>} : vector<32x2xbf16>, vector<2x256xbf16>, vector<32x256xf32> -> vector<32x256xf32>
    %53 = vector.broadcast %20 : vector<1x256xf32> to vector<32x256xf32>
    %54 = arith.mulf %52, %53 : vector<32x256xf32>
    %55 = arith.addf %48, %54 : vector<32x256xf32>
    %c0_26 = arith.constant 0 : index
    %c128_27 = arith.constant 128 : index
    %56 = vector.load %arg10[%c0_26, %c128_27] : memref<2x512xbf16, #tpu.memory_space<vmem>>, vector<2x256xbf16>
    %c4 = arith.constant 4 : index
    %c0_28 = arith.constant 0 : index
    %c0_29 = arith.constant 0 : index
    %57 = vector.load %arg2[%c4, %c0_28, %c0_29] : memref<9x32x2xbf16, #tpu.memory_space<vmem>>, vector<1x32x2xbf16>
    %58 = vector.shape_cast %57 : vector<1x32x2xbf16> to vector<32x2xbf16>
    %cst_30 = arith.constant dense<0.000000e+00> : vector<32x256xf32>
    %59 = tpu.matmul %58, %56, %cst_30 {dimension_numbers = #tpu.dot_dimension_numbers<[1], [0], [0], [1], [0, 0, 1, 1], [], []>} : vector<32x2xbf16>, vector<2x256xbf16>, vector<32x256xf32> -> vector<32x256xf32>
    %60 = arith.addf %55, %59 : vector<32x256xf32>
    %c0_31 = arith.constant 0 : index
    %c129 = arith.constant 129 : index
    %61 = vector.load %arg10[%c0_31, %c129] : memref<2x512xbf16, #tpu.memory_space<vmem>>, vector<2x256xbf16>
    %c5 = arith.constant 5 : index
    %c0_32 = arith.constant 0 : index
    %c0_33 = arith.constant 0 : index
    %62 = vector.load %arg2[%c5, %c0_32, %c0_33] : memref<9x32x2xbf16, #tpu.memory_space<vmem>>, vector<1x32x2xbf16>
    %63 = vector.shape_cast %62 : vector<1x32x2xbf16> to vector<32x2xbf16>
    %cst_34 = arith.constant dense<0.000000e+00> : vector<32x256xf32>
    %64 = tpu.matmul %63, %61, %cst_34 {dimension_numbers = #tpu.dot_dimension_numbers<[1], [0], [0], [1], [0, 0, 1, 1], [], []>} : vector<32x2xbf16>, vector<2x256xbf16>, vector<32x256xf32> -> vector<32x256xf32>
    %65 = vector.broadcast %24 : vector<1x256xf32> to vector<32x256xf32>
    %66 = arith.mulf %64, %65 : vector<32x256xf32>
    %67 = arith.addf %60, %66 : vector<32x256xf32>
    %c0_35 = arith.constant 0 : index
    %c143 = arith.constant 143 : index
    %68 = vector.load %arg10[%c0_35, %c143] : memref<2x512xbf16, #tpu.memory_space<vmem>>, vector<2x256xbf16>
    %c6 = arith.constant 6 : index
    %c0_36 = arith.constant 0 : index
    %c0_37 = arith.constant 0 : index
    %69 = vector.load %arg2[%c6, %c0_36, %c0_37] : memref<9x32x2xbf16, #tpu.memory_space<vmem>>, vector<1x32x2xbf16>
    %70 = vector.shape_cast %69 : vector<1x32x2xbf16> to vector<32x2xbf16>
    %cst_38 = arith.constant dense<0.000000e+00> : vector<32x256xf32>
    %71 = tpu.matmul %70, %68, %cst_38 {dimension_numbers = #tpu.dot_dimension_numbers<[1], [0], [0], [1], [0, 0, 1, 1], [], []>} : vector<32x2xbf16>, vector<2x256xbf16>, vector<32x256xf32> -> vector<32x256xf32>
    %72 = vector.broadcast %20 : vector<1x256xf32> to vector<32x256xf32>
    %73 = arith.mulf %71, %72 : vector<32x256xf32>
    %74 = arith.addf %67, %73 : vector<32x256xf32>
    %c0_39 = arith.constant 0 : index
    %c144 = arith.constant 144 : index
    %75 = vector.load %arg10[%c0_39, %c144] : memref<2x512xbf16, #tpu.memory_space<vmem>>, vector<2x256xbf16>
    %c7 = arith.constant 7 : index
    %c0_40 = arith.constant 0 : index
    %c0_41 = arith.constant 0 : index
    %76 = vector.load %arg2[%c7, %c0_40, %c0_41] : memref<9x32x2xbf16, #tpu.memory_space<vmem>>, vector<1x32x2xbf16>
    %77 = vector.shape_cast %76 : vector<1x32x2xbf16> to vector<32x2xbf16>
    %cst_42 = arith.constant dense<0.000000e+00> : vector<32x256xf32>
    %78 = tpu.matmul %77, %75, %cst_42 {dimension_numbers = #tpu.dot_dimension_numbers<[1], [0], [0], [1], [0, 0, 1, 1], [], []>} : vector<32x2xbf16>, vector<2x256xbf16>, vector<32x256xf32> -> vector<32x256xf32>
    %79 = arith.addf %74, %78 : vector<32x256xf32>
    %c0_43 = arith.constant 0 : index
    %c145 = arith.constant 145 : index
    %80 = vector.load %arg10[%c0_43, %c145] : memref<2x512xbf16, #tpu.memory_space<vmem>>, vector<2x256xbf16>
    %c8 = arith.constant 8 : index
    %c0_44 = arith.constant 0 : index
    %c0_45 = arith.constant 0 : index
    %81 = vector.load %arg2[%c8, %c0_44, %c0_45] : memref<9x32x2xbf16, #tpu.memory_space<vmem>>, vector<1x32x2xbf16>
    %82 = vector.shape_cast %81 : vector<1x32x2xbf16> to vector<32x2xbf16>
    %cst_46 = arith.constant dense<0.000000e+00> : vector<32x256xf32>
    %83 = tpu.matmul %82, %80, %cst_46 {dimension_numbers = #tpu.dot_dimension_numbers<[1], [0], [0], [1], [0, 0, 1, 1], [], []>} : vector<32x2xbf16>, vector<2x256xbf16>, vector<32x256xf32> -> vector<32x256xf32>
    %84 = vector.broadcast %24 : vector<1x256xf32> to vector<32x256xf32>
    %85 = arith.mulf %83, %84 : vector<32x256xf32>
    %86 = arith.addf %79, %85 : vector<32x256xf32>
    %c0_47 = arith.constant 0 : index
    %c0_48 = arith.constant 0 : index
    %87 = vector.load %arg3[%c0_47, %c0_48] : memref<32x1xf32, #tpu.memory_space<vmem>>, vector<32x1xf32>
    %88 = vector.broadcast %87 : vector<32x1xf32> to vector<32x256xf32>
    %89 = arith.addf %86, %88 : vector<32x256xf32>
    %cst_49 = arith.constant 0.000000e+00 : f32
    %90 = vector.broadcast %cst_49 : f32 to vector<32x256xf32>
    %91 = arith.maximumf %89, %90 : vector<32x256xf32>
    %c0_50 = arith.constant 0 : index
    %c0_51 = arith.constant 0 : index
    %92 = vector.load %arg4[%c0_50, %c0_51] : memref<32x32xbf16, #tpu.memory_space<vmem>>, vector<32x32xbf16>
    %93 = arith.truncf %91 : vector<32x256xf32> to vector<32x256xbf16>
    %cst_52 = arith.constant dense<0.000000e+00> : vector<32x256xf32>
    %94 = tpu.matmul %92, %93, %cst_52 {dimension_numbers = #tpu.dot_dimension_numbers<[1], [0], [0], [1], [0, 0, 1, 1], [], []>} : vector<32x32xbf16>, vector<32x256xbf16>, vector<32x256xf32> -> vector<32x256xf32>
    %c0_53 = arith.constant 0 : index
    %c0_54 = arith.constant 0 : index
    %95 = vector.load %arg5[%c0_53, %c0_54] : memref<32x1xf32, #tpu.memory_space<vmem>>, vector<32x1xf32>
    %96 = vector.broadcast %95 : vector<32x1xf32> to vector<32x256xf32>
    %97 = arith.addf %94, %96 : vector<32x256xf32>
    %cst_55 = arith.constant 0.000000e+00 : f32
    %98 = vector.broadcast %cst_55 : f32 to vector<32x256xf32>
    %99 = arith.maximumf %97, %98 : vector<32x256xf32>
    %cst_56 = arith.constant 0.000000e+00 : bf16
    %100 = vector.broadcast %cst_56 : bf16 to vector<32x512xbf16>
    %c0_57 = arith.constant 0 : index
    %c0_58 = arith.constant 0 : index
    %101 = vector.load %arg11[%c0_57, %c0_58] : memref<32x512xbf16, #tpu.memory_space<vmem>>, vector<32x512xbf16>
    tpu.vector_store %arg11[%c0_57, %c0_58], %100 {strides = array<i32>} : memref<32x512xbf16, #tpu.memory_space<vmem>>, vector<32x512xbf16>,
    %102 = arith.truncf %99 : vector<32x256xf32> to vector<32x256xbf16>
    %c0_59 = arith.constant 0 : index
    %c128_60 = arith.constant 128 : index
    %103 = vector.load %arg11[%c0_59, %c128_60] : memref<32x512xbf16, #tpu.memory_space<vmem>>, vector<32x256xbf16>
    tpu.vector_store %arg11[%c0_59, %c128_60], %102 {strides = array<i32>} : memref<32x512xbf16, #tpu.memory_space<vmem>>, vector<32x256xbf16>,
    %c0_61 = arith.constant 0 : index
    %c111_62 = arith.constant 111 : index
    %104 = vector.load %arg11[%c0_61, %c111_62] : memref<32x512xbf16, #tpu.memory_space<vmem>>, vector<32x256xbf16>
    %c0_63 = arith.constant 0 : index
    %c0_64 = arith.constant 0 : index
    %c0_65 = arith.constant 0 : index
    %105 = vector.load %arg6[%c0_63, %c0_64, %c0_65] : memref<9x4x32xbf16, #tpu.memory_space<vmem>>, vector<1x4x32xbf16>
    %106 = vector.shape_cast %105 : vector<1x4x32xbf16> to vector<4x32xbf16>
    %cst_66 = arith.constant dense<0.000000e+00> : vector<4x256xf32>
    %107 = tpu.matmul %106, %104, %cst_66 {dimension_numbers = #tpu.dot_dimension_numbers<[1], [0], [0], [1], [0, 0, 1, 1], [], []>} : vector<4x32xbf16>, vector<32x256xbf16>, vector<4x256xf32> -> vector<4x256xf32>
    %108 = vector.broadcast %20 : vector<1x256xf32> to vector<4x256xf32>
    %109 = arith.mulf %107, %108 : vector<4x256xf32>
    %c0_67 = arith.constant 0 : index
    %c112_68 = arith.constant 112 : index
    %110 = vector.load %arg11[%c0_67, %c112_68] : memref<32x512xbf16, #tpu.memory_space<vmem>>, vector<32x256xbf16>
    %c1_69 = arith.constant 1 : index
    %c0_70 = arith.constant 0 : index
    %c0_71 = arith.constant 0 : index
    %111 = vector.load %arg6[%c1_69, %c0_70, %c0_71] : memref<9x4x32xbf16, #tpu.memory_space<vmem>>, vector<1x4x32xbf16>
    %112 = vector.shape_cast %111 : vector<1x4x32xbf16> to vector<4x32xbf16>
    %cst_72 = arith.constant dense<0.000000e+00> : vector<4x256xf32>
    %113 = tpu.matmul %112, %110, %cst_72 {dimension_numbers = #tpu.dot_dimension_numbers<[1], [0], [0], [1], [0, 0, 1, 1], [], []>} : vector<4x32xbf16>, vector<32x256xbf16>, vector<4x256xf32> -> vector<4x256xf32>
    %114 = arith.addf %109, %113 : vector<4x256xf32>
    %c0_73 = arith.constant 0 : index
    %c113_74 = arith.constant 113 : index
    %115 = vector.load %arg11[%c0_73, %c113_74] : memref<32x512xbf16, #tpu.memory_space<vmem>>, vector<32x256xbf16>
    %c2_75 = arith.constant 2 : index
    %c0_76 = arith.constant 0 : index
    %c0_77 = arith.constant 0 : index
    %116 = vector.load %arg6[%c2_75, %c0_76, %c0_77] : memref<9x4x32xbf16, #tpu.memory_space<vmem>>, vector<1x4x32xbf16>
    %117 = vector.shape_cast %116 : vector<1x4x32xbf16> to vector<4x32xbf16>
    %cst_78 = arith.constant dense<0.000000e+00> : vector<4x256xf32>
    %118 = tpu.matmul %117, %115, %cst_78 {dimension_numbers = #tpu.dot_dimension_numbers<[1], [0], [0], [1], [0, 0, 1, 1], [], []>} : vector<4x32xbf16>, vector<32x256xbf16>, vector<4x256xf32> -> vector<4x256xf32>
    %119 = vector.broadcast %24 : vector<1x256xf32> to vector<4x256xf32>
    %120 = arith.mulf %118, %119 : vector<4x256xf32>
    %121 = arith.addf %114, %120 : vector<4x256xf32>
    %c0_79 = arith.constant 0 : index
    %c127_80 = arith.constant 127 : index
    %122 = vector.load %arg11[%c0_79, %c127_80] : memref<32x512xbf16, #tpu.memory_space<vmem>>, vector<32x256xbf16>
    %c3_81 = arith.constant 3 : index
    %c0_82 = arith.constant 0 : index
    %c0_83 = arith.constant 0 : index
    %123 = vector.load %arg6[%c3_81, %c0_82, %c0_83] : memref<9x4x32xbf16, #tpu.memory_space<vmem>>, vector<1x4x32xbf16>
    %124 = vector.shape_cast %123 : vector<1x4x32xbf16> to vector<4x32xbf16>
    %cst_84 = arith.constant dense<0.000000e+00> : vector<4x256xf32>
    %125 = tpu.matmul %124, %122, %cst_84 {dimension_numbers = #tpu.dot_dimension_numbers<[1], [0], [0], [1], [0, 0, 1, 1], [], []>} : vector<4x32xbf16>, vector<32x256xbf16>, vector<4x256xf32> -> vector<4x256xf32>
    %126 = vector.broadcast %20 : vector<1x256xf32> to vector<4x256xf32>
    %127 = arith.mulf %125, %126 : vector<4x256xf32>
    %128 = arith.addf %121, %127 : vector<4x256xf32>
    %c0_85 = arith.constant 0 : index
    %c128_86 = arith.constant 128 : index
    %129 = vector.load %arg11[%c0_85, %c128_86] : memref<32x512xbf16, #tpu.memory_space<vmem>>, vector<32x256xbf16>
    %c4_87 = arith.constant 4 : index
    %c0_88 = arith.constant 0 : index
    %c0_89 = arith.constant 0 : index
    %130 = vector.load %arg6[%c4_87, %c0_88, %c0_89] : memref<9x4x32xbf16, #tpu.memory_space<vmem>>, vector<1x4x32xbf16>
    %131 = vector.shape_cast %130 : vector<1x4x32xbf16> to vector<4x32xbf16>
    %cst_90 = arith.constant dense<0.000000e+00> : vector<4x256xf32>
    %132 = tpu.matmul %131, %129, %cst_90 {dimension_numbers = #tpu.dot_dimension_numbers<[1], [0], [0], [1], [0, 0, 1, 1], [], []>} : vector<4x32xbf16>, vector<32x256xbf16>, vector<4x256xf32> -> vector<4x256xf32>
    %133 = arith.addf %128, %132 : vector<4x256xf32>
    %c0_91 = arith.constant 0 : index
    %c129_92 = arith.constant 129 : index
    %134 = vector.load %arg11[%c0_91, %c129_92] : memref<32x512xbf16, #tpu.memory_space<vmem>>, vector<32x256xbf16>
    %c5_93 = arith.constant 5 : index
    %c0_94 = arith.constant 0 : index
    %c0_95 = arith.constant 0 : index
    %135 = vector.load %arg6[%c5_93, %c0_94, %c0_95] : memref<9x4x32xbf16, #tpu.memory_space<vmem>>, vector<1x4x32xbf16>
    %136 = vector.shape_cast %135 : vector<1x4x32xbf16> to vector<4x32xbf16>
    %cst_96 = arith.constant dense<0.000000e+00> : vector<4x256xf32>
    %137 = tpu.matmul %136, %134, %cst_96 {dimension_numbers = #tpu.dot_dimension_numbers<[1], [0], [0], [1], [0, 0, 1, 1], [], []>} : vector<4x32xbf16>, vector<32x256xbf16>, vector<4x256xf32> -> vector<4x256xf32>
    %138 = vector.broadcast %24 : vector<1x256xf32> to vector<4x256xf32>
    %139 = arith.mulf %137, %138 : vector<4x256xf32>
    %140 = arith.addf %133, %139 : vector<4x256xf32>
    %c0_97 = arith.constant 0 : index
    %c143_98 = arith.constant 143 : index
    %141 = vector.load %arg11[%c0_97, %c143_98] : memref<32x512xbf16, #tpu.memory_space<vmem>>, vector<32x256xbf16>
    %c6_99 = arith.constant 6 : index
    %c0_100 = arith.constant 0 : index
    %c0_101 = arith.constant 0 : index
    %142 = vector.load %arg6[%c6_99, %c0_100, %c0_101] : memref<9x4x32xbf16, #tpu.memory_space<vmem>>, vector<1x4x32xbf16>
    %143 = vector.shape_cast %142 : vector<1x4x32xbf16> to vector<4x32xbf16>
    %cst_102 = arith.constant dense<0.000000e+00> : vector<4x256xf32>
    %144 = tpu.matmul %143, %141, %cst_102 {dimension_numbers = #tpu.dot_dimension_numbers<[1], [0], [0], [1], [0, 0, 1, 1], [], []>} : vector<4x32xbf16>, vector<32x256xbf16>, vector<4x256xf32> -> vector<4x256xf32>
    %145 = vector.broadcast %20 : vector<1x256xf32> to vector<4x256xf32>
    %146 = arith.mulf %144, %145 : vector<4x256xf32>
    %147 = arith.addf %140, %146 : vector<4x256xf32>
    %c0_103 = arith.constant 0 : index
    %c144_104 = arith.constant 144 : index
    %148 = vector.load %arg11[%c0_103, %c144_104] : memref<32x512xbf16, #tpu.memory_space<vmem>>, vector<32x256xbf16>
    %c7_105 = arith.constant 7 : index
    %c0_106 = arith.constant 0 : index
    %c0_107 = arith.constant 0 : index
    %149 = vector.load %arg6[%c7_105, %c0_106, %c0_107] : memref<9x4x32xbf16, #tpu.memory_space<vmem>>, vector<1x4x32xbf16>
    %150 = vector.shape_cast %149 : vector<1x4x32xbf16> to vector<4x32xbf16>
    %cst_108 = arith.constant dense<0.000000e+00> : vector<4x256xf32>
    %151 = tpu.matmul %150, %148, %cst_108 {dimension_numbers = #tpu.dot_dimension_numbers<[1], [0], [0], [1], [0, 0, 1, 1], [], []>} : vector<4x32xbf16>, vector<32x256xbf16>, vector<4x256xf32> -> vector<4x256xf32>
    %152 = arith.addf %147, %151 : vector<4x256xf32>
    %c0_109 = arith.constant 0 : index
    %c145_110 = arith.constant 145 : index
    %153 = vector.load %arg11[%c0_109, %c145_110] : memref<32x512xbf16, #tpu.memory_space<vmem>>, vector<32x256xbf16>
    %c8_111 = arith.constant 8 : index
    %c0_112 = arith.constant 0 : index
    %c0_113 = arith.constant 0 : index
    %154 = vector.load %arg6[%c8_111, %c0_112, %c0_113] : memref<9x4x32xbf16, #tpu.memory_space<vmem>>, vector<1x4x32xbf16>
    %155 = vector.shape_cast %154 : vector<1x4x32xbf16> to vector<4x32xbf16>
    %cst_114 = arith.constant dense<0.000000e+00> : vector<4x256xf32>
    %156 = tpu.matmul %155, %153, %cst_114 {dimension_numbers = #tpu.dot_dimension_numbers<[1], [0], [0], [1], [0, 0, 1, 1], [], []>} : vector<4x32xbf16>, vector<32x256xbf16>, vector<4x256xf32> -> vector<4x256xf32>
    %157 = vector.broadcast %24 : vector<1x256xf32> to vector<4x256xf32>
    %158 = arith.mulf %156, %157 : vector<4x256xf32>
    %159 = arith.addf %152, %158 : vector<4x256xf32>
    %c0_115 = arith.constant 0 : index
    %c0_116 = arith.constant 0 : index
    %160 = vector.load %arg7[%c0_115, %c0_116] : memref<4x1xf32, #tpu.memory_space<vmem>>, vector<4x1xf32>
    %161 = vector.broadcast %160 : vector<4x1xf32> to vector<4x256xf32>
    %162 = arith.addf %159, %161 : vector<4x256xf32>
    %163 = vector.extract_strided_slice %162 {offsets = [0, 0], sizes = [2, 256], strides = [1, 1]} : vector<4x256xf32> to vector<2x256xf32>
    %cst_117 = arith.constant 2.000000e+00 : f32
    %164 = vector.broadcast %cst_117 : f32 to vector<2x256xf32>
    %165 = arith.addf %163, %164 : vector<2x256xf32>
    %166 = arith.negf %165 : vector<2x256xf32>
    %167 = math.exp %166 : vector<2x256xf32>
    %cst_118 = arith.constant 1.000000e+00 : f32
    %168 = vector.broadcast %cst_118 : f32 to vector<2x256xf32>
    %169 = arith.addf %168, %167 : vector<2x256xf32>
    %170 = arith.divf %168, %169 : vector<2x256xf32>
    %cst_119 = arith.constant 9.99999974E-5 : f32
    %171 = vector.broadcast %cst_119 : f32 to vector<2x256xf32>
    %172 = arith.addf %170, %171 : vector<2x256xf32>
    %173 = vector.extract_strided_slice %162 {offsets = [2, 0], sizes = [2, 256], strides = [1, 1]} : vector<4x256xf32> to vector<2x256xf32>
    %c0_120 = arith.constant 0 : index
    %c0_121 = arith.constant 0 : index
    %c0_122 = arith.constant 0 : index
    %174 = vector.load %arg1[%c0_120, %c0_121, %c0_122] : memref<1x4x256xf32, #tpu.memory_space<vmem>>, vector<1x2x256xf32>
    %175 = vector.shape_cast %174 : vector<1x2x256xf32> to vector<2x256xf32>
    %176 = arith.mulf %172, %175 : vector<2x256xf32>
    %177 = arith.addf %176, %173 : vector<2x256xf32>
    %c0_123 = arith.constant 0 : index
    %c0_124 = arith.constant 0 : index
    %c0_125 = arith.constant 0 : index
    %178 = vector.load %arg8[%c0_123, %c0_124, %c0_125] : memref<1x4x256xf32, #tpu.memory_space<vmem>>, vector<1x2x256xf32>
    %179 = vector.shape_cast %178 : vector<1x2x256xf32> to vector<2x256xf32>
    %180 = vector.shape_cast %177 : vector<2x256xf32> to vector<1x2x256xf32>
    tpu.vector_store %arg8[%c0_123, %c0_124, %c0_125], %180 {strides = array<i32>} : memref<1x4x256xf32, #tpu.memory_space<vmem>>, vector<1x2x256xf32>,
    %c0_126 = arith.constant 0 : index
    %c2_127 = arith.constant 2 : index
    %c0_128 = arith.constant 0 : index
    %181 = vector.load %arg1[%c0_126, %c2_127, %c0_128] : memref<1x4x256xf32, #tpu.memory_space<vmem>>, vector<1x2x256xf32>
    %182 = vector.shape_cast %181 : vector<1x2x256xf32> to vector<2x256xf32>
    %c0_129 = arith.constant 0 : index
    %c2_130 = arith.constant 2 : index
    %c0_131 = arith.constant 0 : index
    %183 = vector.load %arg8[%c0_129, %c2_130, %c0_131] : memref<1x4x256xf32, #tpu.memory_space<vmem>>, vector<1x2x256xf32>
    %184 = vector.shape_cast %183 : vector<1x2x256xf32> to vector<2x256xf32>
    %185 = vector.shape_cast %182 : vector<2x256xf32> to vector<1x2x256xf32>
    tpu.vector_store %arg8[%c0_129, %c2_130, %c0_131], %185 {strides = array<i32>} : memref<1x4x256xf32, #tpu.memory_space<vmem>>, vector<1x2x256xf32>,
    %186 = math.log %172 : vector<2x256xf32>
    %187 = vector.shape_cast %186 : vector<2x256xf32> to vector<1x2x256xf32>
    %cst_132 = arith.constant dense<0.000000e+00> : vector<1xf32>
    %188 = vector.multi_reduction <add>, %187, %cst_132 [1, 2] : vector<1x2x256xf32> to vector<1xf32>
    %189 = vector.shape_cast %188 : vector<1xf32> to vector<1x1x1xf32>
    %190 = vector.extract %189[0, 0, 0] : f32 from vector<1x1x1xf32>
    %191 = vector.broadcast %190 : f32 to vector<1x1xf32>
    %192 = vector.shape_cast %191 : vector<1x1xf32> to vector<1x1x1xf32>
    %c0_133 = arith.constant 0 : index
    %c0_134 = arith.constant 0 : index
    %c0_135 = arith.constant 0 : index
    %193 = vector.load %arg9[%c0_133, %c0_134, %c0_135] : memref<1x1x1xf32, #tpu.memory_space<vmem>>, vector<1x1x1xf32>
    tpu.vector_store %arg9[%c0_133, %c0_134, %c0_135], %192 {strides = array<i32>} : memref<1x1x1xf32, #tpu.memory_space<vmem>>, vector<1x1x1xf32>,
    return
  }
  func.func @transform_0(%arg0: i32) -> (i32, i32, i32) {
    %c0_i32 = arith.constant 0 : i32
    %c0_i32_0 = arith.constant 0 : i32
    %c0_i32_1 = arith.constant 0 : i32
    return %arg0, %c0_i32, %c0_i32_0 : i32, i32, i32
  }
  func.func @transform_1(%arg0: i32) -> (i32, i32, i32) {
    %c0_i32 = arith.constant 0 : i32
    %c0_i32_0 = arith.constant 0 : i32
    %c0_i32_1 = arith.constant 0 : i32
    %c0_i32_2 = arith.constant 0 : i32
    return %c0_i32, %c0_i32_0, %c0_i32_1 : i32, i32, i32
  }
  func.func @transform_2(%arg0: i32) -> (i32, i32) {
    %c0_i32 = arith.constant 0 : i32
    %c0_i32_0 = arith.constant 0 : i32
    %c0_i32_1 = arith.constant 0 : i32
    return %c0_i32, %c0_i32_0 : i32, i32
  }
  func.func @transform_3(%arg0: i32) -> (i32, i32) {
    %c0_i32 = arith.constant 0 : i32
    %c0_i32_0 = arith.constant 0 : i32
    %c0_i32_1 = arith.constant 0 : i32
    return %c0_i32, %c0_i32_0 : i32, i32
  }
  func.func @transform_4(%arg0: i32) -> (i32, i32) {
    %c0_i32 = arith.constant 0 : i32
    %c0_i32_0 = arith.constant 0 : i32
    %c0_i32_1 = arith.constant 0 : i32
    return %c0_i32, %c0_i32_0 : i32, i32
  }
  func.func @transform_5(%arg0: i32) -> (i32, i32, i32) {
    %c0_i32 = arith.constant 0 : i32
    %c0_i32_0 = arith.constant 0 : i32
    %c0_i32_1 = arith.constant 0 : i32
    %c0_i32_2 = arith.constant 0 : i32
    return %c0_i32, %c0_i32_0, %c0_i32_1 : i32, i32, i32
  }
  func.func @transform_6(%arg0: i32) -> (i32, i32) {
    %c0_i32 = arith.constant 0 : i32
    %c0_i32_0 = arith.constant 0 : i32
    %c0_i32_1 = arith.constant 0 : i32
    return %c0_i32, %c0_i32_0 : i32, i32
  }
  func.func @transform_7(%arg0: i32) -> (i32, i32, i32) {
    %c0_i32 = arith.constant 0 : i32
    %c0_i32_0 = arith.constant 0 : i32
    %c0_i32_1 = arith.constant 0 : i32
    return %arg0, %c0_i32, %c0_i32_0 : i32, i32, i32
  }
  func.func @transform_8(%arg0: i32) -> (i32, i32, i32) {
    %c0_i32 = arith.constant 0 : i32
    %c0_i32_0 = arith.constant 0 : i32
    %c0_i32_1 = arith.constant 0 : i32
    return %arg0, %c0_i32, %c0_i32_0 : i32, i32, i32
  }
}

</mosaic_0001>

<bundles_post_ra>
// kernel: coupling_layer_forward.1
= control target key start
LH: loop header
LB: loop body
LE: loop exit
PB: predicated region body
PF: predicated region fallthrough
CT: control target
= control target key end

     0   :  { %s2792_s27 = smov 0   ;;  %s3298_s0 = inlined_call_operand.vmem [shape: f32[2,4,256], index: 0, kind: input, shape index: {}]   ;;  %s3299_s1 = inlined_call_operand.vmem [shape: bf16[9,32,2], index: 1, kind: input, shape index: {}]   ;;  %s3300_s2 = inlined_call_operand.vmem [shape: f32[32,1], index: 2, kind: input, shape index: {}]   ;;  %s3301_s3 = inlined_call_operand.vmem [shape: bf16[32,32], index: 3, kind: input, shape index: {}]   ;;  %s3302_s4 = inlined_call_operand.vmem [shape: f32[32,1], index: 4, kind: input, shape index: {}]   ;;  %s3303_s5 = inlined_call_operand.vmem [shape: bf16[9,4,32], index: 5, kind: input, shape index: {}]   ;;  %s3304_s6 = inlined_call_operand.vmem [shape: f32[4,1], index: 6, kind: input, shape index: {}]   ;;  %s3305_s7 = inlined_call_operand.vmem [shape: f32[2,4,256], index: 7, kind: output, shape index: {0}]   ;;  %s3306_s8 = inlined_call_operand.vmem [shape: f32[2,1,1], index: 8, kind: output, shape index: {1}]  }
   0x1 LB: > { %s2447_s28 = sadd.s32 4294967295, %s2734_s27   ;;  %p2451_p0 = scmp.ge.s32.totalorder %s2734_s27, 1  ;;  %s2734_s27 = sphi %s2792_s27, %s19_s27  }
   0x2   : > { %p265_p1 = scmp.lt.s32.totalorder %s2734_s27, 3 }
   0x4   : > { %p266_p2 = pnand %p2451_p0, %p265_p1 }
   0x5   : > { %p302_p3 = scmp.lt.s32.totalorder (!%p266_p2), %s2447_s28, 1  ;;  %v316_v0 = vlaneseq (!%p266_p2)  ;;  %v2736_v1 = vmov (!%p266_p2), 0   ;;  %v2737_v2 = vmov (!%p266_p2), 1966171168   ;;  %s2738_s11 = smov (!%p266_p2), 17   ;;  %v1512_v22 = vld [vmem:[%s3300_s2 + $0x8] sm:$0xff] (!%p266_p2) }
   0x6   : > { %269 = sbr.rel (%p266_p2) target bundleno = 1338 (0x53a), region = 48  ;;  %355 = vst [vmem:[#allocation2] sm:$0xf] (!%p266_p2), %v2736_v1  ;;  %v366_v3 = vunpack.c.l.s4 (!%p266_p2), %v2737_v2  ;;  %476 = vmatprep.mubr.bf16.mxu0 (!%p266_p2), %v2736_v1  ;;  %598 = vmatprep.mubr.bf16.mxu1 (!%p266_p2), %v2736_v1  ;;  %s2739_s12 = smov (!%p266_p2), 16   ;;  %v1511_v23 = vld [vmem:[%s3300_s2] sm:$0xff] (!%p266_p2)  ;;  %v1513_v24 = vld [vmem:[%s3300_s2 + $0x10] sm:$0xff] (!%p266_p2) }
   0x7   : > { %2653 = vset.pattern.permute.xlu1 (!%p266_p2), %v2736_v1  ;;  %2652 = vset.pattern.permute.xlu0 (!%p266_p2), %v2736_v1  ;;  %v369_v5 = vshrl.u32 (!%p266_p2), %v316_v0, 7  ;;  %s2740_s13 = smov (!%p266_p2), 15   ;;  %s2741_s14 = smov (!%p266_p2), 1   ;;  %v1514_v25 = vld [vmem:[%s3300_s2 + $0x18] sm:$0xff] (!%p266_p2)  ;;  %v1559_v26 = vld [vmem:[%s3302_s4] sm:$0xff] (!%p266_p2)  ;;  %v1560_v27 = vld [vmem:[%s3302_s4 + $0x8] sm:$0xff] (!%p266_p2) }
   0x8   : > { %v367_v4 = vunpack.c.0.s8 (!%p266_p2), %v366_v3  ;;  %s2742_s15 = smov (!%p266_p2), 127   ;;  %s2743_s16 = smov (!%p266_p2), 113   ;;  %v1561_v28 = vld [vmem:[%s3302_s4 + $0x10] sm:$0xff] (!%p266_p2)  ;;  %v1562_v29 = vld [vmem:[%s3302_s4 + $0x18] sm:$0xff] (!%p266_p2)  ;;  %vm427_vm0 = vcmask (!%p266_p2), 138240   ;;  %vm437_vm1 = vcmask (!%p266_p2), 1040384  }
   0x9   : > { %s2744_s17 = smov (!%p266_p2), 112   ;;  %s2745_s18 = smov (!%p266_p2), 111   ;;  %v2695_v37 = vld [vmem:[%s3299_s1] sm:$0xff] (!%p266_p2)   ;;  %vm430_vm2 = vcmask (!%p266_p2), 15360   ;;  %vm551_vm3 = vcmask (!%p266_p2), 130048   ;;  %vm673_vm4 = vcmask (!%p266_p2), 121856  }
   0xa   : > { %v2817_v8 = vsub.s32 (!%p266_p2), %v367_v4, %v369_v5  ;;  %v2696_v45 = vld [vmem:[%s3299_s1 + $0x8] sm:$0xff] (!%p266_p2)   ;;  %v2697_v46 = vld [vmem:[%s3299_s1 + $0x10] sm:$0xff] (!%p266_p2)   ;;  %vm803_vm5 = vcmask (!%p266_p2), 7168   ;;  %v2698_v56 = vld [vmem:[%s3299_s1 + $0x18] sm:$0xff] (!%p266_p2)   ;;  %vm1045_vm6 = vcmask (!%p266_p2), 1039360   ;;  %vm1175_vm7 = vcmask (!%p266_p2), 924672  }
   0xb   : > { %v2699_v57 = vld [vmem:[%s3299_s1 + $0x20] sm:$0xff] (!%p266_p2)   ;;  %vm1305_vm8 = vcmask (!%p266_p2), 916480   ;;  %vm1427_vm9 = vcmask (!%p266_p2), 908288   ;;  %vm1593_vm14 = vcmask (!%p266_p2), 261120   ;;  %vm2351_vm15 = vcmask (!%p266_p2), 1041408  }
   0xd   : > { %s3308_s28 = smov (!%p302_p3, %s2447_s28), 1 }
   0xe   : > { %s2573_s29 = sshll.u32 %s3308_s28, 3 }
   0xf   : > { %s2814_s10 = scalar_lea.vmem %s3298_s0, %s2573_s29 }
  0x10   : > { %v356_v6 = vld [vmem:[%s2814_s10] sm:$0xcc] }
  0x11   : > { %v358_v7 = vcombine.high %v356_v6, %v356_v6 }
  0x13   : > { %v2460_v9 = vpack.c.bf16 %v358_v7, %v356_v6  ;;  %v2700_v7 = vld [vmem:[%s3299_s1 + $0x28] sm:$0xff]  }
  0x15   : > { %v371_v10 = vrot.slane %v2460_v9, %v2817_v8  ;;  %v2701_v9 = vld [vmem:[%s3299_s1 + $0x30] sm:$0xff]  }
  0x17   : > { %v372_v11 = vcombine.high %v371_v10, %v371_v10 }
  0x19   : > { %2461 = vst.sshfl [vmem:[#allocation2 + $0x1] sm:$0x5 pattern:$0x73625140] %v372_v11 }
  0x20   : > { %v2464_v12 = vld.sshfl [vmem:[#allocation2] sm:$0x13 pattern:$0x75316420] }
  0x21   : > { %v412_v13 = vrot.slane %v2464_v12, %v2817_v8  ;;  %v405_v14 = vcombine.high %v2464_v12, %v2464_v12  ;;  %v2514_v17 = vld.sshfl [vmem:[#allocation2 + $0x1] sm:$0x13 pattern:$0x75316420] }
  0x22   : > { %v1030_v18 = vrot.slane %v2514_v17, %v2817_v8  ;;  %v1023_v19 = vcombine.high %v2514_v17, %v2514_v17  ;;  %v2504_v51 = vld.sshfl [vmem:[#allocation2 + $0x1] sm:$0x11 pattern:$0x75316420]  ;;  %v2703_v17 = vld [vmem:[%s3299_s1 + $0x50] sm:$0xff]  }
  0x23   : > { %421 = vrot.lane.b32.xlu0 %v412_v13, %s2738_s11  ;;  %v420_v15 = vcombine.high %v412_v13, %v412_v13  ;;  %v419_v16 = vrot.slane %v405_v14, %v2817_v8  ;;  %v911_v54 = vcombine.high %v2504_v51, %v2504_v51  ;;  %v918_v6 = vrot.slane %v2504_v51, %v2817_v8 }
  0x24   : > { %v1037_v20 = vrot.slane %v1023_v19, %v2817_v8  ;;  %v1038_v21 = vcombine.high %v1030_v18, %v1030_v18  ;;  %v2746_v51 = vmov 0.0  }
  0x25   : > { %425 = vrot.lane.b32.xlu1 %v420_v15, %s2738_s11  ;;  %v925_v61 = vrot.slane %v911_v54, %v2817_v8  ;;  %v933_v12 = vsel %vm437_vm1, %v918_v6, 0 }
  0x27   : > { %423 = vrot.lane.b32.xlu0 %v419_v16, %s2738_s11 }
  0x29   : > { %545 = vrot.lane.b32.xlu1 %v412_v13, %s2739_s12 }
  0x2b   : > { %667 = vrot.lane.b32.xlu0 %v412_v13, %s2740_s13 }
  0x2d   : > { %549 = vrot.lane.b32.xlu1 %v420_v15, %s2739_s12 }
  0x2f   : > { %547 = vrot.lane.b32.xlu0 %v419_v16, %s2739_s12 }
  0x31   : > { %669 = vrot.lane.b32.xlu1 %v419_v16, %s2740_s13 }
  0x33   : > { %671 = vrot.lane.b32.xlu0 %v420_v15, %s2740_s13 }
  0x35   : > { %797 = vrot.lane.b32.xlu1 %v412_v13, %s2741_s14 }
  0x37   : > { %1039 = vrot.lane.b32.xlu0 %v1030_v18, %s2742_s15 }
  0x39   : > { %801 = vrot.lane.b32.xlu1 %v420_v15, %s2741_s14 }
  0x3b   : > { %799 = vrot.lane.b32.xlu0 %v419_v16, %s2741_s14  ;;  %v2702_v16 = vld [vmem:[%s3299_s1 + $0x38] sm:$0xff]  }
  0x3d   : > { %1041 = vrot.lane.b32.xlu1 %v1037_v20, %s2742_s15 }
  0x3f   : > { %1043 = vrot.lane.b32.xlu0 %v1038_v21, %s2742_s15 }
  0x41   : > { %1169 = vrot.lane.b32.xlu1 %v1030_v18, %s2743_s16 }
  0x43   : > { %1171 = vrot.lane.b32.xlu0 %v1037_v20, %s2743_s16 }
  0x45   : > { %1173 = vrot.lane.b32.xlu1 %v1038_v21, %s2743_s16 }
  0x47   : > { %1299 = vrot.lane.b32.xlu0 %v1030_v18, %s2744_s17 }
  0x49   : > { %1301 = vrot.lane.b32.xlu1 %v1037_v20, %s2744_s17 }
  0x4b   : > { %1303 = vrot.lane.b32.xlu0 %v1038_v21, %s2744_s17 }
  0x4d   : > { %1421 = vrot.lane.b32.xlu1 %v1030_v18, %s2745_s18 }
  0x4f   : > { %1423 = vrot.lane.b32.xlu0 %v1037_v20, %s2745_s18 }
  0x51   : > { %1425 = vrot.lane.b32.xlu1 %v1038_v21, %s2745_s18 }
  0x53   : > { %1517 = vperm.xlu0 %2652, %v1511_v23  }
  0x55   : > { %1522 = vperm.xlu1 %2653, %v1512_v22  }
  0x57   : > { %1532 = vperm.xlu0 %2652, %v1514_v25   ;;  %v2705_v25 = vld [vmem:[%s3299_s1 + $0x58] sm:$0xff]  }
  0x59   : > { %1527 = vperm.xlu1 %2653, %v1513_v24   ;;  %v2704_v24 = vld [vmem:[%s3299_s1 + $0x40] sm:$0xff]  }
  0x5b   : > { %1570 = vperm.xlu0 %2652, %v1560_v27  }
  0x5d   : > { %1565 = vperm.xlu1 %2653, %v1559_v26  }
  0x5f   : > { %1580 = vperm.xlu0 %2652, %v1562_v29  }
  0x61   : > { %1575 = vperm.xlu1 %2653, %v1561_v28  }
  0x63   : > { %2660 = vrot.lane.b32.xlu0 %v2736_v1, %s2739_s12 }
  0x65   : > { %2655 = vrot.lane.b32.xlu1 %v2736_v1, %s2738_s11 }
  0x67   : > { %2670 = vrot.lane.b32.xlu0 %v2736_v1, %s2741_s14 }
  0x69   : > { %2665 = vrot.lane.b32.xlu1 %v2736_v1, %s2740_s13 }
  0x6b   : > { %2675 = vrot.lane.b32.xlu0 %v2736_v1, %s2742_s15 }
  0x6f   : > { %2680 = vrot.lane.b32.xlu0 %v2736_v1, %s2743_s16 }
  0x95   : > { %v422_v30 = vpop.permute.xlu0 %421 }
  0x97   : > { %v426_v31 = vpop.permute.xlu1 %425 }
  0x99   : > { %v424_v32 = vpop.permute.xlu0 %423 }
  0x9a   : > { %v429_v33 = vsel %vm427_vm0, %v424_v32, %v426_v31  ;;  %v428_v34 = vsel %vm427_vm0, %v422_v30, %v424_v32  ;;  %v2706_v31 = vld [vmem:[%s3299_s1 + $0x48] sm:$0xff]   ;;  %v2707_v32 = vld [vmem:[%s3299_s1 + $0x60] sm:$0xff]  }
  0x9b   : > { %v546_v35 = vpop.permute.xlu1 %545  ;;  %2465 = vmatprep.subr.msk.bf16.mxu0 %vm437_vm1, %v429_v33  ;;  %v439_v36 = vsel %vm437_vm1, %v428_v34, 0  ;;  %v2708_v34 = vld [vmem:[%s3299_s1 + $0x68] sm:$0xff]  }
  0x9c   : > { %445 = vmatpush1.bf16.msra.mxu0 %v439_v36  ;;  %v2710_v36 = vld [vmem:[%s3299_s1 + $0x78] sm:$0xff]  }
  0x9d   : > { %v668_v38 = vpop.permute.xlu0 %667 }
  0x9f   : > { %v550_v39 = vpop.permute.xlu1 %549  ;;  %2466 = vmatmul.mubr.msk.bf16.vlgmr.msra.gmra.mrb[0].mxu0 %vm430_vm2, %v2695_v37  ;;  %v2711_v37 = vld [vmem:[%s3299_s1 + $0x80] sm:$0xff]  }
  0xa0   : > { %486 = vmatprep.mubr.bf16.mxu0 %v2736_v1 }
  0xa1   : > { %v548_v40 = vpop.permute.xlu0 %547 }
  0xa2   : > { %v553_v41 = vsel %vm551_vm3, %v548_v40, %v550_v39  ;;  %v552_v42 = vsel %vm551_vm3, %v546_v35, %v548_v40  ;;  %v2709_v35 = vld [vmem:[%s3299_s1 + $0x70] sm:$0xff]   ;;  %v317_v39 = vand.u32 127, %v316_v0 }
  0xa3   : > { %v670_v43 = vpop.permute.xlu1 %669  ;;  %2475 = vmatprep.subr.msk.bf16.mxu1 %vm437_vm1, %v553_v41  ;;  %v561_v44 = vsel %vm437_vm1, %v552_v42, 0 }
  0xa4   : > { %567 = vmatpush1.bf16.msra.mxu1 %v561_v44  ;;  %v674_v47 = vsel %vm673_vm4, %v668_v38, %v670_v43  ;;  %v2712_v38 = vld [vmem:[%s3299_s1 + $0x88] sm:$0xff]   ;;  %v318_v44 = vadd.s32 128, %v317_v39 }
  0xa5   : > { %v672_v48 = vpop.permute.xlu0 %671  ;;  %v683_v52 = vsel %vm437_vm1, %v674_v47, 0 }
  0xa6   : > { %v675_v49 = vsel %vm673_vm4, %v670_v43, %v672_v48 }
  0xa7   : > { %v798_v50 = vpop.permute.xlu1 %797  ;;  %2467 = vmatmul.mubr.msk.bf16.gmra.mrb[4].mxu0 %vm430_vm2, %v2696_v45  ;;  %2476 = vmatmul.mubr.msk.bf16.vlgmr.msra.gmra.mrb[0].mxu1 %vm430_vm2, %v2697_v46  ;;  %v323_v45 = vand.u32 15, %v317_v39  ;;  %v330_v46 = vand.u32 15, %v318_v44 }
  0xa8   : > { %2485 = vmatprep.subr.msk.bf16.mxu0 %vm437_vm1, %v675_v49  ;;  %608 = vmatprep.mubr.bf16.mxu1 %v2736_v1 }
  0xa9   : > { %689 = vmatpush1.bf16.msra.mxu0 %v683_v52  ;;  %v1040_v53 = vpop.permute.xlu0 %1039  ;;  %720 = vmatprep.mubr.bf16.mxu0 %v2736_v1  ;;  %vm343_vm10 = vcmp.ne.s32.totalorder %v323_v45, 0  ;;  %vm349_vm11 = vcmp.ne.s32.totalorder %v323_v45, 15  ;;  %vm344_vm12 = vcmp.ne.s32.totalorder %v330_v46, 0  ;;  %vm350_vm13 = vcmp.ne.s32.totalorder %v330_v46, 15 }
  0xaa   : > { %v3003_v52 = vsel %vm343_vm10, 1.0, %v2746_v51  ;;  %v3007_v0 = vsel %vm344_vm12, 1.0, %v2746_v51  ;;  %v3009_v54 = vsel %vm350_vm13, 1.0, %v2746_v51 }
  0xab   : > { %v802_v55 = vpop.permute.xlu1 %801 }
  0xad   : > { %v800_v58 = vpop.permute.xlu0 %799 }
  0xae   : > { %v804_v59 = vsel %vm803_vm5, %v798_v50, %v800_v58  ;;  %v805_v60 = vsel %vm803_vm5, %v800_v58, %v802_v55 }
  0xaf   : > { %v813_v62 = vsel %vm437_vm1, %v804_v59, 0  ;;  %v1042_v63 = vpop.permute.xlu1 %1041  ;;  %2477 = vmatmul.mubr.msk.bf16.gmra.mrb[4].mxu1 %vm430_vm2, %v2698_v56  ;;  %2486 = vmatmul.mubr.msk.bf16.vlgmr.msra.gmra.mrb[8].mxu0 %vm430_vm2, %v2699_v57 }
  0xb0   : > { %v1046_v2 = vsel %vm1045_vm6, %v1040_v53, %v1042_v63  ;;  %2495 = vmatprep.subr.msk.bf16.mxu1 %vm437_vm1, %v805_v60  ;;  %730 = vmatprep.mubr.bf16.mxu0 %v2736_v1  ;;  %v3005_v53 = vsel %vm349_vm11, 1.0, %v2746_v51 }
  0xb1   : > { %v1055_v3 = vsel %vm437_vm1, %v1046_v2, 0  ;;  %819 = vmatpush1.bf16.msra.mxu1 %v813_v62  ;;  %v1044_v4 = vpop.permute.xlu0 %1043  ;;  %850 = vmatprep.mubr.bf16.mxu1 %v2736_v1 }
  0xb2   : > { %v1047_v5 = vsel %vm1045_vm6, %v1042_v63, %v1044_v4  ;;  %2505 = vmatprep.subr.msk.bf16.mxu1 %vm437_vm1, %v925_v61 }
  0xb3   : > { %2515 = vmatprep.subr.msk.bf16.mxu0 %vm437_vm1, %v1047_v5  ;;  %v1170_v10 = vpop.permute.xlu1 %1169 }
  0xb4   : > { %1061 = vmatpush1.bf16.msra.mxu0 %v1055_v3 }
  0xb5   : > { %v1172_v11 = vpop.permute.xlu0 %1171 }
  0xb6   : > { %v1176_v15 = vsel %vm1175_vm7, %v1170_v10, %v1172_v11 }
  0xb7   : > { %2487 = vmatmul.mubr.msk.bf16.gmra.mrb[12].mxu0 %vm430_vm2, %v2700_v7  ;;  %2496 = vmatmul.mubr.msk.bf16.vlgmr.msra.gmra.mrb[8].mxu1 %vm430_vm2, %v2701_v9  ;;  %v1174_v8 = vpop.permute.xlu1 %1173  ;;  %v1185_v19 = vsel %vm437_vm1, %v1176_v15, 0 }
  0xb8   : > { %860 = vmatprep.mubr.bf16.mxu1 %v2736_v1  ;;  %1092 = vmatprep.mubr.bf16.mxu0 %v2736_v1  ;;  %v1177_v13 = vsel %vm1175_vm7, %v1172_v11, %v1174_v8 }
  0xb9   : > { %2525 = vmatprep.subr.msk.bf16.mxu0 %vm437_vm1, %v1177_v13  ;;  %939 = vmatpush1.bf16.msra.mxu1 %v933_v12  ;;  %v1300_v14 = vpop.permute.xlu0 %1299 }
  0xbb   : > { %v1302_v18 = vpop.permute.xlu1 %1301 }
  0xbc   : > { %v1306_v26 = vsel %vm1305_vm8, %v1300_v14, %v1302_v18 }
  0xbd   : > { %v1304_v20 = vpop.permute.xlu0 %1303  ;;  %v1315_v29 = vsel %vm437_vm1, %v1306_v26, 0 }
  0xbe   : > { %v1307_v21 = vsel %vm1305_vm8, %v1302_v18, %v1304_v20 }
  0xbf   : > { %2497 = vmatmul.mubr.msk.bf16.gmra.mrb[12].mxu1 %vm430_vm2, %v2702_v16  ;;  %2516 = vmatmul.mubr.msk.bf16.vlgmr.msra.gmra.mrb[16].mxu0 %vm430_vm2, %v2703_v17  ;;  %v1422_v22 = vpop.permute.xlu1 %1421 }
  0xc0   : > { %1191 = vmatpush1.bf16.msra.mxu0 %v1185_v19  ;;  %970 = vmatprep.mubr.bf16.mxu1 %v2736_v1 }
  0xc1   : > { %1102 = vmatprep.mubr.bf16.mxu0 %v2736_v1  ;;  %2535 = vmatprep.subr.msk.bf16.mxu1 %vm437_vm1, %v1307_v21  ;;  %v1424_v23 = vpop.permute.xlu0 %1423 }
  0xc2   : > { %v1428_v30 = vsel %vm1427_vm9, %v1422_v22, %v1424_v23 }
  0xc3   : > { %v1426_v27 = vpop.permute.xlu1 %1425  ;;  %v1437_v33 = vsel %vm437_vm1, %v1428_v30, 0 }
  0xc4   : > { %v1429_v28 = vsel %vm1427_vm9, %v1424_v23, %v1426_v27 }
  0xc5   : > { %2545 = vmatprep.subr.msk.bf16.mxu0 %vm437_vm1, %v1429_v28 }
  0xc7   : > { %2506 = vmatmul.mubr.msk.bf16.vlgmr.msra.gmra.mrb[0].mxu1 %vm430_vm2, %v2704_v24  ;;  %2517 = vmatmul.mubr.msk.bf16.gmra.mrb[20].mxu0 %vm430_vm2, %v2705_v25 }
  0xc8   : > { %980 = vmatprep.mubr.bf16.mxu1 %v2736_v1  ;;  %1222 = vmatprep.mubr.bf16.mxu0 %v2736_v1 }
  0xc9   : > { %1321 = vmatpush1.bf16.msra.mxu1 %v1315_v29 }
  0xcf   : > { %2507 = vmatmul.mubr.msk.bf16.gmra.mrb[4].mxu1 %vm430_vm2, %v2706_v31  ;;  %2526 = vmatmul.mubr.msk.bf16.vlgmr.msra.gmra.mrb[24].mxu0 %vm430_vm2, %v2707_v32 }
  0xd0   : > { %1443 = vmatpush1.bf16.msra.mxu0 %v1437_v33  ;;  %1232 = vmatprep.mubr.bf16.mxu0 %v2736_v1 }
  0xd1   : > { %1352 = vmatprep.mubr.bf16.mxu1 %v2736_v1 }
  0xd7   : > { %2527 = vmatmul.mubr.msk.bf16.gmra.mrb[28].mxu0 %vm430_vm2, %v2708_v34  ;;  %2536 = vmatmul.mubr.msk.bf16.vlgmr.msra.gmra.mrb[0].mxu1 %vm430_vm2, %v2709_v35 }
  0xd8   : > { %1362 = vmatprep.mubr.bf16.mxu1 %v2736_v1  ;;  %1474 = vmatprep.mubr.bf16.mxu0 %v2736_v1 }
  0xdf   : > { %2537 = vmatmul.mubr.msk.bf16.gmra.mrb[4].mxu1 %vm430_vm2, %v2710_v36  ;;  %2546 = vmatmul.mubr.msk.bf16.vlgmr.msra.gmra.mrb[32].mxu0 %vm430_vm2, %v2711_v37 }
  0xe0   : > { %1484 = vmatprep.mubr.bf16.mxu0 %v2736_v1  ;;  %1632 = vmatprep.mubr.bf16.mxu1 %v2736_v1 }
  0xe7   : > { %2547 = vmatmul.mubr.msk.bf16.gmra.mrb[36].mxu0 %vm430_vm2, %v2712_v38 }
  0xe8   : > { %1745 = vmatprep.mubr.bf16.mxu0 %v2736_v1 }
 0x172   : > { %v478_v40 = vpop.f32.mrb[0].mxu0 }
 0x173   : > { %v480_v41 = vpop.f32.mrb[1].mxu0  ;;  %v497_v56 = vmul.f32 %v3003_v52, %v478_v40 }
 0x174   : > { %v482_v42 = vpop.f32.mrb[2].mxu0  ;;  %v498_v59 = vmul.f32 %v3007_v0, %v480_v41 }
 0x175   : > { %v484_v43 = vpop.f32.mrb[3].mxu0  ;;  %v499_v62 = vmul.f32 %v3003_v52, %v482_v42 }
 0x176   : > { %v500_v4 = vmul.f32 %v3007_v0, %v484_v43 }
 0x17a   : > { %v488_v47 = vpop.f32.mrb[4].mxu0 }
 0x17b   : > { %v490_v48 = vpop.f32.mrb[5].mxu0  ;;  %v501_v12 = vmul.f32 %v3003_v52, %v488_v47 }
 0x17c   : > { %v492_v49 = vpop.f32.mrb[6].mxu0  ;;  %v502_v8 = vmul.f32 %v3007_v0, %v490_v48 }
 0x17d   : > { %v494_v50 = vpop.f32.mrb[7].mxu0  ;;  %v503_v17 = vmul.f32 %v3003_v52, %v492_v49 }
 0x17e   : > { %v504_v18 = vmul.f32 %v3007_v0, %v494_v50 }
 0x182   : > { %v722_v55 = vpop.f32.mrb[8].mxu0 }
 0x183   : > { %v741_v57 = vmul.f32 %v3005_v53, %v722_v55  ;;  %v724_v58 = vpop.f32.mrb[9].mxu0 }
 0x184   : > { %v742_v60 = vmul.f32 %v3009_v54, %v724_v58  ;;  %v726_v61 = vpop.f32.mrb[10].mxu0 }
 0x185   : > { %v2575_v63 = vadd.f32 %v741_v57, %v497_v56  ;;  %v743_v2 = vmul.f32 %v3005_v53, %v726_v61  ;;  %v728_v3 = vpop.f32.mrb[11].mxu0 }
 0x186   : > { %v2580_v5 = vadd.f32 %v742_v60, %v498_v59  ;;  %v744_v6 = vmul.f32 %v3009_v54, %v728_v3 }
 0x187   : > { %v2585_v7 = vadd.f32 %v743_v2, %v499_v62 }
 0x188   : > { %v2590_v9 = vadd.f32 %v744_v6, %v500_v4 }
 0x18a   : > { %v732_v10 = vpop.f32.mrb[12].mxu0  ;;  %v852_v11 = vpop.f32.mrb[8].mxu1 }
 0x18b   : > { %v745_v13 = vmul.f32 %v3005_v53, %v732_v10  ;;  %v871_v14 = vmul.f32 %v3003_v52, %v852_v11  ;;  %v734_v15 = vpop.f32.mrb[13].mxu0  ;;  %v854_v16 = vpop.f32.mrb[9].mxu1 }
 0x18c   : > { %v746_v19 = vmul.f32 %v3009_v54, %v734_v15  ;;  %v872_v20 = vmul.f32 %v3007_v0, %v854_v16  ;;  %v736_v21 = vpop.f32.mrb[14].mxu0  ;;  %v856_v22 = vpop.f32.mrb[10].mxu1 }
 0x18d   : > { %v2595_v23 = vadd.f32 %v745_v13, %v501_v12  ;;  %v2576_v24 = vadd.f32 %v2575_v63, %v871_v14  ;;  %v747_v25 = vmul.f32 %v3005_v53, %v736_v21  ;;  %v873_v26 = vmul.f32 %v3003_v52, %v856_v22  ;;  %v738_v27 = vpop.f32.mrb[15].mxu0  ;;  %v858_v28 = vpop.f32.mrb[11].mxu1 }
 0x18e   : > { %v2600_v29 = vadd.f32 %v746_v19, %v502_v8  ;;  %v2581_v30 = vadd.f32 %v2580_v5, %v872_v20  ;;  %v748_v31 = vmul.f32 %v3009_v54, %v738_v27  ;;  %v874_v32 = vmul.f32 %v3007_v0, %v858_v28 }
 0x18f   : > { %v2605_v33 = vadd.f32 %v747_v25, %v503_v17  ;;  %v2586_v34 = vadd.f32 %v2585_v7, %v873_v26 }
 0x190   : > { %v2610_v35 = vadd.f32 %v748_v31, %v504_v18  ;;  %v2591_v36 = vadd.f32 %v2590_v9, %v874_v32 }
 0x192   : > { %v862_v37 = vpop.f32.mrb[12].mxu1  ;;  %v1094_v38 = vpop.f32.mrb[16].mxu0 }
 0x193   : > { %v875_v39 = vmul.f32 %v3003_v52, %v862_v37  ;;  %v1113_v40 = vmul.f32 %v3005_v53, %v1094_v38  ;;  %v864_v41 = vpop.f32.mrb[13].mxu1  ;;  %v1096_v42 = vpop.f32.mrb[17].mxu0 }
 0x194   : > { %v876_v43 = vmul.f32 %v3007_v0, %v864_v41  ;;  %v1114_v44 = vmul.f32 %v3009_v54, %v1096_v42  ;;  %v866_v45 = vpop.f32.mrb[14].mxu1  ;;  %v1098_v46 = vpop.f32.mrb[18].mxu0 }
 0x195   : > { %v2596_v47 = vadd.f32 %v2595_v23, %v875_v39  ;;  %v2577_v48 = vadd.f32 %v2576_v24, %v1113_v40  ;;  %v877_v49 = vmul.f32 %v3003_v52, %v866_v45  ;;  %v1115_v50 = vmul.f32 %v3005_v53, %v1098_v46  ;;  %v868_v51 = vpop.f32.mrb[15].mxu1  ;;  %v1100_v55 = vpop.f32.mrb[19].mxu0 }
 0x196   : > { %v2601_v56 = vadd.f32 %v2600_v29, %v876_v43  ;;  %v2582_v57 = vadd.f32 %v2581_v30, %v1114_v44  ;;  %v878_v58 = vmul.f32 %v3007_v0, %v868_v51  ;;  %v1116_v59 = vmul.f32 %v3009_v54, %v1100_v55 }
 0x197   : > { %v2606_v60 = vadd.f32 %v2605_v33, %v877_v49  ;;  %v2587_v61 = vadd.f32 %v2586_v34, %v1115_v50 }
 0x198   : > { %v2611_v62 = vadd.f32 %v2610_v35, %v878_v58  ;;  %v2592_v63 = vadd.f32 %v2591_v36, %v1116_v59 }
 0x19a   : > { %v1104_v2 = vpop.f32.mrb[20].mxu0 }
 0x19b   : > { %v1117_v3 = vmul.f32 %v3005_v53, %v1104_v2  ;;  %v1106_v4 = vpop.f32.mrb[21].mxu0  ;;  %v1518_v2 = vpop.permute.xlu0 %1517 }
 0x19c   : > { %v1118_v5 = vmul.f32 %v3009_v54, %v1106_v4  ;;  %v1108_v6 = vpop.f32.mrb[22].mxu0 }
 0x19d   : > { %v2597_v7 = vadd.f32 %v2596_v47, %v1117_v3  ;;  %v1119_v9 = vmul.f32 %v3005_v53, %v1108_v6  ;;  %v1110_v10 = vpop.f32.mrb[23].mxu0 }
 0x19e   : > { %v2602_v11 = vadd.f32 %v2601_v56, %v1118_v5  ;;  %v1120_v12 = vmul.f32 %v3009_v54, %v1110_v10 }
 0x19f   : > { %v2607_v8 = vadd.f32 %v2606_v60, %v1119_v9  ;;  %v1523_v9 = vpop.permute.xlu1 %1522 }
 0x1a0   : > { %v2612_v13 = vadd.f32 %v2611_v62, %v1120_v12 }
 0x1a2   : > { %v1224_v14 = vpop.f32.mrb[24].mxu0 }
 0x1a3   : > { %v1243_v15 = vmul.f32 %v3003_v52, %v1224_v14  ;;  %v1226_v16 = vpop.f32.mrb[25].mxu0 }
 0x1a4   : > { %v1244_v17 = vmul.f32 %v3007_v0, %v1226_v16  ;;  %v1228_v18 = vpop.f32.mrb[26].mxu0 }
 0x1a5   : > { %v1245_v19 = vmul.f32 %v3003_v52, %v1228_v18  ;;  %v1230_v20 = vpop.f32.mrb[27].mxu0  ;;  %v2578_v21 = vadd.f32 %v2577_v48, %v1243_v15 }
 0x1a6   : > { %v1246_v22 = vmul.f32 %v3007_v0, %v1230_v20  ;;  %v2583_v23 = vadd.f32 %v2582_v57, %v1244_v17 }
 0x1a7   : > { %v2588_v24 = vadd.f32 %v2587_v61, %v1245_v19 }
 0x1a8   : > { %v2593_v25 = vadd.f32 %v2592_v63, %v1246_v22 }
 0x1aa   : > { %v1234_v26 = vpop.f32.mrb[28].mxu0  ;;  %v1354_v27 = vpop.f32.mrb[0].mxu1 }
 0x1ab   : > { %v1247_v28 = vmul.f32 %v3003_v52, %v1234_v26  ;;  %v2579_v29 = vadd.f32 %v2578_v21, %v1354_v27  ;;  %v1236_v30 = vpop.f32.mrb[29].mxu0  ;;  %v1356_v31 = vpop.f32.mrb[1].mxu1 }
 0x1ac   : > { %v1248_v32 = vmul.f32 %v3007_v0, %v1236_v30  ;;  %v2584_v33 = vadd.f32 %v2583_v23, %v1356_v31  ;;  %v1238_v34 = vpop.f32.mrb[30].mxu0  ;;  %v1358_v35 = vpop.f32.mrb[2].mxu1 }
 0x1ad   : > { %v1249_v36 = vmul.f32 %v3003_v52, %v1238_v34  ;;  %v2589_v37 = vadd.f32 %v2588_v24, %v1358_v35  ;;  %v1240_v38 = vpop.f32.mrb[31].mxu0  ;;  %v1360_v39 = vpop.f32.mrb[3].mxu1  ;;  %v2598_v40 = vadd.f32 %v2597_v7, %v1247_v28 }
 0x1ae   : > { %v1250_v41 = vmul.f32 %v3007_v0, %v1240_v38  ;;  %v2594_v42 = vadd.f32 %v2593_v25, %v1360_v39  ;;  %v2603_v43 = vadd.f32 %v2602_v11, %v1248_v32  ;;  %v1528_v26 = vpop.permute.xlu1 %1527  ;;  %v1533_v32 = vpop.permute.xlu0 %1532 }
 0x1af   : > { %v2608_v44 = vadd.f32 %v2607_v8, %v1249_v36 }
 0x1b0   : > { %v2613_v45 = vadd.f32 %v2612_v13, %v1250_v41 }
 0x1b2   : > { %v1364_v46 = vpop.f32.mrb[4].mxu1  ;;  %v1476_v47 = vpop.f32.mrb[32].mxu0 }
 0x1b3   : > { %v2599_v48 = vadd.f32 %v2598_v40, %v1364_v46  ;;  %v1495_v49 = vmul.f32 %v3005_v53, %v1476_v47  ;;  %v1366_v50 = vpop.f32.mrb[5].mxu1  ;;  %v1478_v51 = vpop.f32.mrb[33].mxu0 }
 0x1b4   : > { %v2604_v55 = vadd.f32 %v2603_v43, %v1366_v50  ;;  %v1496_v56 = vmul.f32 %v3009_v54, %v1478_v51  ;;  %v1368_v57 = vpop.f32.mrb[6].mxu1  ;;  %v1480_v58 = vpop.f32.mrb[34].mxu0  ;;  %v2713_v43 = vld [vmem:[%s3301_s3] sm:$0xff]  }
 0x1b5   : > { %v1503_v59 = vadd.f32 %v2579_v29, %v1495_v49  ;;  %v2609_v60 = vadd.f32 %v2608_v44, %v1368_v57  ;;  %v1497_v61 = vmul.f32 %v3005_v53, %v1480_v58  ;;  %v1370_v62 = vpop.f32.mrb[7].mxu1  ;;  %v1482_v63 = vpop.f32.mrb[35].mxu0  ;;  %v2714_v44 = vld [vmem:[%s3301_s3 + $0x8] sm:$0xff]  }
 0x1b6   : > { %v1504_v3 = vadd.f32 %v2584_v33, %v1496_v56  ;;  %v2614_v4 = vadd.f32 %v2613_v45, %v1370_v62  ;;  %v1498_v5 = vmul.f32 %v3009_v54, %v1482_v63  ;;  %v1566_v45 = vpop.permute.xlu1 %1565  ;;  %v1571_v49 = vpop.permute.xlu0 %1570 }
 0x1b7   : > { %v1535_v6 = vadd.f32 %v1518_v2, %v1503_v59  ;;  %v1505_v7 = vadd.f32 %v2589_v37, %v1497_v61 }
 0x1b8   : > { %v1536_v10 = vadd.f32 %v1518_v2, %v1504_v3  ;;  %v1506_v11 = vadd.f32 %v2594_v42, %v1498_v5 }
 0x1b9   : > { %v1537_v12 = vadd.f32 %v1523_v9, %v1505_v7  ;;  %v1543_v14 = vmax.f32 %v1535_v6, 0.0 }
 0x1ba   : > { %v1538_v8 = vadd.f32 %v1523_v9, %v1506_v11  ;;  %v1486_v13 = vpop.f32.mrb[36].mxu0  ;;  %v1544_v18 = vmax.f32 %v1536_v10, 0.0  ;;  %v1576_v63 = vpop.permute.xlu1 %1575 }
 0x1bb   : > { %v1545_v15 = vmax.f32 %v1537_v12, 0.0  ;;  %v1499_v16 = vmul.f32 %v3005_v53, %v1486_v13  ;;  %v1488_v17 = vpop.f32.mrb[37].mxu0  ;;  %v1581_v6 = vpop.permute.xlu0 %1580 }
 0x1bc   : > { %v1546_v19 = vmax.f32 %v1538_v8, 0.0  ;;  %v1500_v20 = vmul.f32 %v3009_v54, %v1488_v17  ;;  %v1490_v21 = vpop.f32.mrb[38].mxu0 }
 0x1bd   : > { %v1555_v22 = vpack.c.bf16 %v1545_v15, %v1543_v14  ;;  %v1507_v23 = vadd.f32 %v2599_v48, %v1499_v16  ;;  %v1501_v24 = vmul.f32 %v3005_v53, %v1490_v21  ;;  %v1492_v25 = vpop.f32.mrb[39].mxu0 }
 0x1be   : > { %v1508_v27 = vadd.f32 %v2604_v55, %v1500_v20  ;;  %v1502_v28 = vmul.f32 %v3009_v54, %v1492_v25  ;;  %v1556_v29 = vpack.c.bf16 %v1546_v19, %v1544_v18  ;;  %v2302_v18 = vld [vmem:[%s3304_s6] sm:$0xf]  ;;  %v2656_v21 = vpop.permute.xlu1 %2655 }
 0x1bf   : > { %v1539_v30 = vadd.f32 %v1528_v26, %v1507_v23  ;;  %v1509_v31 = vadd.f32 %v2609_v60, %v1501_v24  ;;  %v2661_v19 = vpop.permute.xlu0 %2660 }
 0x1c0   : > { %v1540_v33 = vadd.f32 %v1528_v26, %v1508_v27  ;;  %v1510_v34 = vadd.f32 %v2614_v4, %v1502_v28  ;;  %1600 = vmatprep.subr.bf16.mxu1 %v1556_v29  ;;  %v2662_v29 = vunpack.i.l.bf16 %v2661_v19 }
 0x1c1   : > { %v1541_v35 = vadd.f32 %v1533_v32, %v1509_v31  ;;  %1601 = vmatpush1.bf16.msra.mxu1 %v1555_v22  ;;  %v1547_v37 = vmax.f32 %v1539_v30, 0.0 }
 0x1c2   : > { %v1542_v36 = vadd.f32 %v1533_v32, %v1510_v34  ;;  %v1548_v39 = vmax.f32 %v1540_v33, 0.0  ;;  %v2666_v23 = vpop.permute.xlu1 %2665 }
 0x1c3   : > { %v1549_v38 = vmax.f32 %v1541_v35, 0.0  ;;  %v3156_v20 = vpop.permute.xlu0 %2670 }
 0x1c4   : > { %v1550_v40 = vmax.f32 %v1542_v36, 0.0  ;;  %v2657_v36 = vunpack.i.l.bf16 %v2656_v21 }
 0x1c5   : > { %v1557_v41 = vpack.c.bf16 %v1549_v38, %v1547_v37 }
 0x1c6   : > { %v1558_v42 = vpack.c.bf16 %v1550_v40, %v1548_v39 }
 0x1c7   : > { %v3158_v22 = vpop.permute.xlu0 %2675 }
 0x1c8   : > { %1602 = vmatprep.subr.bf16.mxu1 %v1558_v42 }
 0x1c9   : > { %1603 = vmatpush1.bf16.msra.mxu1 %v1557_v41 }
 0x1cb   : > { %v3160_v24 = vpop.permute.xlu0 %2680 }
 0x1cc   : > { %2550 = vmatmul.mubr.msk.bf16.vlgmr.msra.gmra.mrb[16].mxu1 %vm1593_vm14, %v2713_v43 }
 0x1cd   : > { %1642 = vmatprep.mubr.bf16.mxu1 %v2736_v1 }
 0x1d4   : > { %2551 = vmatmul.mubr.msk.bf16.gmra.mrb[20].mxu1 %vm1593_vm14, %v2714_v44 }
 0x1d5   : > { %1813 = vmatprep.mubr.bf16.mxu1 %v2736_v1 }
 0x29f   : > { %v1634_v46 = vpop.f32.mrb[16].mxu1 }
 0x2a0   : > { %v1635_v47 = vadd.f32 %v1634_v46, %v1566_v45  ;;  %v1636_v48 = vpop.f32.mrb[17].mxu1 }
 0x2a1   : > { %v1637_v50 = vadd.f32 %v1636_v48, %v1566_v45  ;;  %v1638_v51 = vpop.f32.mrb[18].mxu1 }
 0x2a2   : > { %v1639_v55 = vadd.f32 %v1638_v51, %v1571_v49  ;;  %v1640_v56 = vpop.f32.mrb[19].mxu1  ;;  %v1653_v58 = vmax.f32 %v1635_v47, 0.0  ;;  %v2658_v47 = vunpack.i.h.bf16 %v2656_v21  ;;  %v2677_v21 = vunpack.i.l.bf16 %v3158_v22 }
 0x2a3   : > { %v1641_v57 = vadd.f32 %v1640_v56, %v1571_v49  ;;  %v1654_v60 = vmax.f32 %v1637_v50, 0.0  ;;  %v1683_v56 = vld [vmem:[%s3303_s5] sm:$0x3] }
 0x2a4   : > { %v1655_v59 = vmax.f32 %v1639_v55, 0.0 }
 0x2a5   : > { %v1656_v61 = vmax.f32 %v1641_v57, 0.0  ;;  %v2663_v57 = vunpack.i.h.bf16 %v2661_v19 }
 0x2a6   : > { %v3077_v62 = vpack.c.bf16 %v1655_v59, %v1653_v58  ;;  %v2667_v58 = vunpack.i.l.bf16 %v2666_v23 }
 0x2a7   : > { %v3079_v2 = vpack.c.bf16 %v1656_v61, %v1654_v60  ;;  %v1644_v3 = vpop.f32.mrb[20].mxu1 }
 0x2a8   : > { %v1645_v4 = vadd.f32 %v1644_v3, %v1576_v63  ;;  %v1646_v5 = vpop.f32.mrb[21].mxu1  ;;  %1760 = vrot.lane.b32.xlu0 %v3077_v62, %s2739_s12  ;;  %1692 = vrot.lane.b32.xlu1 %v3077_v62, %s2738_s11 }
 0x2a9   : > { %v1647_v7 = vadd.f32 %v1646_v5, %v1576_v63  ;;  %v1648_v9 = vpop.f32.mrb[22].mxu1  ;;  %v2553_v5 = vld [vmem:[%s3303_s5 + $0x2] sm:$0x3] }
 0x2aa   : > { %v1649_v10 = vadd.f32 %v1648_v9, %v1581_v6  ;;  %v1650_v11 = vpop.f32.mrb[23].mxu1  ;;  %v1657_v8 = vmax.f32 %v1645_v4, 0.0 }
 0x2ab   : > { %v1651_v12 = vadd.f32 %v1650_v11, %v1581_v6  ;;  %v1658_v14 = vmax.f32 %v1647_v7, 0.0  ;;  %v2672_v6 = vunpack.i.l.bf16 %v3156_v20  ;;  %v2668_v7 = vunpack.i.h.bf16 %v2666_v23 }
 0x2ac   : > { %v1659_v13 = vmax.f32 %v1649_v10, 0.0  ;;  %1828 = vrot.lane.b32.xlu0 %v3077_v62, %s2740_s13  ;;  %2026 = vrot.lane.b32.xlu1 %v3077_v62, %s2742_s15 }
 0x2ad   : > { %v1660_v15 = vmax.f32 %v1651_v12, 0.0 }
 0x2ae   : > { %v3089_v16 = vpack.c.bf16 %v1659_v13, %v1657_v8 }
 0x2af   : > { %v3091_v17 = vpack.c.bf16 %v1660_v15, %v1658_v14  ;;  %v2555_v14 = vld [vmem:[%s3303_s5 + $0x4] sm:$0x3]  ;;  %v2673_v15 = vunpack.i.h.bf16 %v3156_v20 }
 0x2b0   : > { %1898 = vrot.lane.b32.xlu0 %v3077_v62, %s2741_s14  ;;  %1762 = vrot.lane.b32.xlu1 %v3079_v2, %s2739_s12 }
 0x2b4   : > { %2096 = vrot.lane.b32.xlu0 %v3077_v62, %s2743_s16  ;;  %1830 = vrot.lane.b32.xlu1 %v3079_v2, %s2740_s13 }
 0x2b8   : > { %1694 = vrot.lane.b32.xlu0 %v3079_v2, %s2738_s11  ;;  %1900 = vrot.lane.b32.xlu1 %v3079_v2, %s2741_s14 }
 0x2bc   : > { %2028 = vrot.lane.b32.xlu1 %v3079_v2, %s2742_s15  ;;  %1698 = vrot.lane.b32.xlu0 %v3089_v16, %s2738_s11 }
 0x2c0   : > { %2098 = vrot.lane.b32.xlu1 %v3079_v2, %s2743_s16  ;;  %1766 = vrot.lane.b32.xlu0 %v3089_v16, %s2739_s12 }
 0x2c4   : > { %1904 = vrot.lane.b32.xlu1 %v3089_v16, %s2741_s14  ;;  %1834 = vrot.lane.b32.xlu0 %v3089_v16, %s2740_s13 }
 0x2c8   : > { %1700 = vrot.lane.b32.xlu1 %v3091_v17, %s2738_s11  ;;  %2102 = vrot.lane.b32.xlu0 %v3089_v16, %s2743_s16 }
 0x2cc   : > { %1768 = vrot.lane.b32.xlu1 %v3091_v17, %s2739_s12  ;;  %2685 = vrot.lane.b32.xlu0 %v2736_v1, %s2744_s17 }
 0x2d0   : > { %1836 = vrot.lane.b32.xlu1 %v3091_v17, %s2740_s13  ;;  %1906 = vrot.lane.b32.xlu0 %v3091_v17, %s2741_s14 }
 0x2d4   : > { %2032 = vrot.lane.b32.xlu1 %v3089_v16, %s2742_s15  ;;  %2690 = vrot.lane.b32.xlu0 %v2736_v1, %s2745_s18 }
 0x2d8   : > { %2168 = vrot.lane.b32.xlu1 %v3079_v2, %s2744_s17  ;;  %2104 = vrot.lane.b32.xlu0 %v3091_v17, %s2743_s16  ;;  %s314_s16 = scalar_lea.vmem %s3306_s8, %s3308_s28 }
 0x2dc   : > { %2236 = vrot.lane.b32.xlu1 %v3079_v2, %s2745_s18  ;;  %2234 = vrot.lane.b32.xlu0 %v3077_v62, %s2745_s18 }
 0x2e0   : > { %2034 = vrot.lane.b32.xlu1 %v3091_v17, %s2742_s15  ;;  %2242 = vrot.lane.b32.xlu0 %v3091_v17, %s2745_s18  ;;  %s3273_s15 = scalar_lea.vmem %s3305_s7, %s2573_s29 }
 0x2e4   : > { %2166 = vrot.lane.b32.xlu1 %v3077_v62, %s2744_s17  ;;  %2240 = vrot.lane.b32.xlu0 %v3089_v16, %s2745_s18 }
 0x2e8   : > { %2174 = vrot.lane.b32.xlu1 %v3091_v17, %s2744_s17 }
 0x2ec   : > { %2172 = vrot.lane.b32.xlu1 %v3089_v16, %s2744_s17 }
 0x2f0   : > { %2305 = vperm.xlu1 %2653, %v2302_v18  }
 0x31a   : > { %v1693_v25 = vpop.permute.xlu1 %1692  ;;  %v1761_v26 = vpop.permute.xlu0 %1760 }
 0x31b   : > { %v1770_v33 = vsel %vm551_vm3, %v2662_v29, %v1761_v26  ;;  %v1702_v40 = vsel %vm427_vm0, %v2657_v36, %v1693_v25 }
 0x31e   : > { %v3162_v27 = vpop.permute.xlu1 %2026  ;;  %v1829_v28 = vpop.permute.xlu0 %1828 }
 0x31f   : > { %v1838_v63 = vsel %vm673_vm4, %v2667_v58, %v1829_v28 }
 0x322   : > { %v1763_v30 = vpop.permute.xlu1 %1762  ;;  %v1899_v31 = vpop.permute.xlu0 %1898 }
 0x323   : > { %v1771_v32 = vsel %vm551_vm3, %v1761_v26, %v1763_v30  ;;  %v1908_v12 = vsel %vm803_vm5, %v2672_v6, %v1899_v31 }
 0x324   : > { %1781 = vmatprep.subr.bf16.mxu1 %v1771_v32  ;;  %v2683_v32 = vunpack.i.h.bf16 %v3160_v24 }
 0x325   : > { %1782 = vmatpush1.bf16.msra.mxu1 %v1770_v33 }
 0x326   : > { %v1831_v34 = vpop.permute.xlu1 %1830  ;;  %v3166_v35 = vpop.permute.xlu0 %2096 }
 0x327   : > { %v1839_v55 = vsel %vm673_vm4, %v1829_v28, %v1831_v34  ;;  %v2682_v28 = vunpack.i.l.bf16 %v3160_v24 }
 0x32a   : > { %v1901_v37 = vpop.permute.xlu1 %1900  ;;  %v1695_v38 = vpop.permute.xlu0 %1694 }
 0x32b   : > { %v1703_v39 = vsel %vm427_vm0, %v1693_v25, %v1695_v38  ;;  %v1909_v4 = vsel %vm803_vm5, %v1899_v31, %v1901_v37 }
 0x32c   : > { %1713 = vmatprep.subr.bf16.mxu0 %v1703_v39 }
 0x32d   : > { %1714 = vmatpush1.bf16.msra.mxu0 %v1702_v40 }
 0x32e   : > { %v3170_v41 = vpop.permute.xlu1 %2028  ;;  %v1699_v42 = vpop.permute.xlu0 %1698 }
 0x32f   : > { %v1704_v51 = vsel %vm427_vm0, %v2658_v47, %v1699_v42  ;;  %v2039_v25 = vsel %vm1045_vm6, %v3170_v41, %v2677_v21 }
 0x332   : > { %v3172_v43 = vpop.permute.xlu1 %2098  ;;  %v1767_v44 = vpop.permute.xlu0 %1766 }
 0x333   : > { %v1772_v3 = vsel %vm551_vm3, %v2663_v57, %v1767_v44  ;;  %v2109_v29 = vsel %vm1175_vm7, %v3172_v43, %v2682_v28 }
 0x336   : > { %v1905_v45 = vpop.permute.xlu1 %1904  ;;  %v1835_v46 = vpop.permute.xlu0 %1834 }
 0x337   : > { %v1840_v8 = vsel %vm673_vm4, %v2668_v7, %v1835_v46  ;;  %v1910_v23 = vsel %vm803_vm5, %v2673_v15, %v1905_v45 }
 0x33a   : > { %v1701_v48 = vpop.permute.xlu1 %1700  ;;  %v3174_v49 = vpop.permute.xlu0 %2102 }
 0x33b   : > { %v1705_v50 = vsel %vm427_vm0, %v1699_v42, %v1701_v48  ;;  %v2563_v42 = vld [vmem:[%s3303_s5 + $0xc] sm:$0x3]  ;;  %vm2365_vm0 = vcmask 0  }
 0x33c   : > { %1715 = vmatprep.subr.bf16.mxu0 %v1705_v50 }
 0x33d   : > { %1716 = vmatpush1.bf16.msra.mxu0 %v1704_v51 }
 0x33e   : > { %v1769_v59 = vpop.permute.xlu1 %1768  ;;  %1849 = vmatprep.subr.bf16.mxu0 %v1839_v55  ;;  %v3182_v60 = vpop.permute.xlu0 %2685 }
 0x33f   : > { %v1773_v61 = vsel %vm551_vm3, %v1767_v44, %v1769_v59  ;;  %v2687_v37 = vunpack.i.l.bf16 %v3182_v60  ;;  %v2688_v47 = vunpack.i.h.bf16 %v3182_v60  ;;  %v2565_v59 = vld [vmem:[%s3303_s5 + $0xe] sm:$0x3] }
 0x340   : > { %1783 = vmatprep.subr.bf16.mxu1 %v1773_v61  ;;  %2552 = vmatmul.mubr.msk.bf16.vlgmr.msra.gmra.mrb[40].mxu0 %vm1593_vm14, %v1683_v56  ;;  %v2567_v56 = vld [vmem:[%s3303_s5 + $0x10] sm:$0x3] }
 0x341   : > { %1784 = vmatpush1.bf16.msra.mxu1 %v1772_v3  ;;  %1850 = vmatpush1.bf16.msra.mxu0 %v1838_v63 }
 0x342   : > { %v1837_v9 = vpop.permute.xlu1 %1836  ;;  %v1907_v10 = vpop.permute.xlu0 %1906  ;;  %1919 = vmatprep.subr.bf16.mxu1 %v1909_v4  ;;  %1881 = vmatprep.mubr.bf16.mxu0 %v2736_v1 }
 0x343   : > { %v1841_v11 = vsel %vm673_vm4, %v1835_v46, %v1837_v9  ;;  %v1911_v13 = vsel %vm803_vm5, %v1905_v45, %v1907_v10 }
 0x344   : > { %1851 = vmatprep.subr.bf16.mxu0 %v1841_v11  ;;  %2554 = vmatmul.mubr.msk.bf16.vlgmr.msra.gmra.mrb[24].mxu1 %vm1593_vm14, %v2553_v5 }
 0x345   : > { %1852 = vmatpush1.bf16.msra.mxu0 %v1840_v8  ;;  %1920 = vmatpush1.bf16.msra.mxu1 %v1908_v12 }
 0x346   : > { %v2033_v18 = vpop.permute.xlu1 %2032  ;;  %1969 = vmatprep.subr.bf16.mxu0 %v3079_v2  ;;  %v2691_v19 = vpop.permute.xlu0 %2690  ;;  %1921 = vmatprep.subr.bf16.mxu1 %v1911_v13  ;;  %v2557_v2 = vld [vmem:[%s3303_s5 + $0x6] sm:$0x3] }
 0x347   : > { %1951 = vmatprep.mubr.bf16.mxu1 %v2736_v1  ;;  %v2692_v33 = vunpack.i.l.bf16 %v2691_v19  ;;  %v2693_v44 = vunpack.i.h.bf16 %v2691_v19 }
 0x348   : > { %2556 = vmatmul.mubr.msk.bf16.vlgmr.msra.gmra.mrb[44].mxu0 %vm1593_vm14, %v2555_v14 }
 0x349   : > { %1922 = vmatpush1.bf16.msra.mxu1 %v1910_v23  ;;  %1970 = vmatpush1.bf16.msra.mxu0 %v3077_v62  ;;  %v2038_v62 = vsel %vm1045_vm6, %v3162_v27, %v3170_v41  ;;  %v2108_v27 = vsel %vm1175_vm7, %v3166_v35, %v3172_v43  ;;  %v2561_v41 = vld [vmem:[%s3303_s5 + $0xa] sm:$0x3] }
 0x34a   : > { %v2169_v20 = vpop.permute.xlu1 %2168  ;;  %1971 = vmatprep.subr.bf16.mxu0 %v3091_v17  ;;  %v2105_v26 = vpop.permute.xlu0 %2104  ;;  %2049 = vmatprep.subr.bf16.mxu1 %v2039_v25  ;;  %v2559_v17 = vld [vmem:[%s3303_s5 + $0x8] sm:$0x3] }
 0x34b   : > { %2001 = vmatprep.mubr.bf16.mxu0 %v2736_v1  ;;  %v2111_v34 = vsel %vm1175_vm7, %v2105_v26, %v2683_v32  ;;  %v2110_v35 = vsel %vm1175_vm7, %v3174_v49, %v2105_v26 }
 0x34c   : > { %2558 = vmatmul.mubr.msk.bf16.vlgmr.msra.gmra.mrb[28].mxu1 %vm1593_vm14, %v2557_v2 }
 0x34d   : > { %1972 = vmatpush1.bf16.msra.mxu0 %v3089_v16  ;;  %2050 = vmatpush1.bf16.msra.mxu1 %v2038_v62  ;;  %v2678_v16 = vunpack.i.h.bf16 %v3158_v22  ;;  %v2179_v22 = vsel %vm1305_vm8, %v2169_v20, %v2687_v37 }
 0x34e   : > { %v2237_v30 = vpop.permute.xlu1 %2236  ;;  %v2235_v31 = vpop.permute.xlu0 %2234  ;;  %2119 = vmatprep.subr.bf16.mxu0 %v2109_v29  ;;  %2081 = vmatprep.mubr.bf16.mxu1 %v2736_v1 }
 0x34f   : > { %v2247_v40 = vsel %vm1427_vm9, %v2237_v30, %v2692_v33  ;;  %v2246_v46 = vsel %vm1427_vm9, %v2235_v31, %v2237_v30 }
 0x350   : > { %2560 = vmatmul.mubr.msk.bf16.vlgmr.msra.gmra.mrb[48].mxu0 %vm1593_vm14, %v2559_v17 }
 0x351   : > { %2120 = vmatpush1.bf16.msra.mxu0 %v2108_v27  ;;  %2151 = vmatprep.mubr.bf16.mxu0 %v2736_v1 }
 0x352   : > { %v2035_v36 = vpop.permute.xlu1 %2034  ;;  %2121 = vmatprep.subr.bf16.mxu0 %v2111_v34  ;;  %v2243_v38 = vpop.permute.xlu0 %2242 }
 0x353   : > { %v2040_v24 = vsel %vm1045_vm6, %v2033_v18, %v2035_v36  ;;  %v2041_v39 = vsel %vm1045_vm6, %v2035_v36, %v2678_v16  ;;  %v2249_v49 = vsel %vm1427_vm9, %v2243_v38, %v2693_v44 }
 0x354   : > { %2051 = vmatprep.subr.bf16.mxu1 %v2041_v39 }
 0x355   : > { %2052 = vmatpush1.bf16.msra.mxu1 %v2040_v24  ;;  %2122 = vmatpush1.bf16.msra.mxu0 %v2110_v35 }
 0x356   : > { %v2167_v43 = vpop.permute.xlu1 %2166  ;;  %2189 = vmatprep.subr.bf16.mxu1 %v2179_v22  ;;  %2257 = vmatprep.subr.bf16.mxu0 %v2247_v40  ;;  %v2241_v48 = vpop.permute.xlu0 %2240 }
 0x357   : > { %v2178_v45 = vsel %vm1305_vm8, %v2167_v43, %v2169_v20  ;;  %v2248_v55 = vsel %vm1427_vm9, %v2241_v48, %v2243_v38 }
 0x358   : > { %2562 = vmatmul.mubr.msk.bf16.vlgmr.msra.gmra.mrb[32].mxu1 %vm1593_vm14, %v2561_v41  ;;  %2564 = vmatmul.mubr.msk.bf16.vlgmr.msra.gmra.mrb[52].mxu0 %vm1593_vm14, %v2563_v42 }
 0x359   : > { %2190 = vmatpush1.bf16.msra.mxu1 %v2178_v45  ;;  %2258 = vmatpush1.bf16.msra.mxu0 %v2246_v46 }
 0x35a   : > { %v2175_v50 = vpop.permute.xlu1 %2174  ;;  %2259 = vmatprep.subr.bf16.mxu0 %v2249_v49  ;;  %2221 = vmatprep.mubr.bf16.mxu1 %v2736_v1 }
 0x35b   : > { %v2181_v51 = vsel %vm1305_vm8, %v2175_v50, %v2688_v47  ;;  %2289 = vmatprep.mubr.bf16.mxu0 %v2736_v1  ;;  %v2345_v1 = vld [vmem:[%s2814_s10] sm:$0xcc] }
 0x35c   : > { %2191 = vmatprep.subr.bf16.mxu1 %v2181_v51  ;;  %2346 = vst [vmem:[%s3273_s15] sm:$0xcc] %v2345_v1 }
 0x35d   : > { %2260 = vmatpush1.bf16.msra.mxu0 %v2248_v55 }
 0x35e   : > { %v2173_v57 = vpop.permute.xlu1 %2172 }
 0x35f   : > { %v2180_v58 = vsel %vm1305_vm8, %v2173_v57, %v2175_v50 }
 0x360   : > { %2192 = vmatpush1.bf16.msra.mxu1 %v2180_v58  ;;  %2568 = vmatmul.mubr.msk.bf16.vlgmr.msra.gmra.mrb[56].mxu0 %vm1593_vm14, %v2567_v56 }
 0x363   : > { %2566 = vmatmul.mubr.msk.bf16.vlgmr.msra.gmra.mrb[36].mxu1 %vm1593_vm14, %v2565_v59 }
 0x413   : > { %v1747_v60 = vpop.f32.mrb[40].mxu0 }
 0x414   : > { %v1754_v61 = vmul.f32 %v3003_v52, %v1747_v60  ;;  %v1749_v63 = vpop.f32.mrb[41].mxu0 }
 0x415   : > { %v1755_v3 = vmul.f32 %v3007_v0, %v1749_v63  ;;  %v1751_v4 = vpop.f32.mrb[42].mxu0 }
 0x416   : > { %v1752_v5 = vpop.f32.mrb[43].mxu0 }
 0x417   : > { %v1815_v6 = vpop.f32.mrb[24].mxu1 }
 0x418   : > { %v1822_v7 = vadd.f32 %v1815_v6, %v1754_v61  ;;  %v1817_v9 = vpop.f32.mrb[25].mxu1  ;;  %v2306_v61 = vpop.permute.xlu1 %2305 }
 0x419   : > { %v1823_v10 = vadd.f32 %v1817_v9, %v1755_v3  ;;  %v1819_v11 = vpop.f32.mrb[26].mxu1 }
 0x41a   : > { %v1820_v12 = vpop.f32.mrb[27].mxu1 }
 0x41b   : > { %v1883_v8 = vpop.f32.mrb[44].mxu0  ;;  %v2326_v12 = vld [vmem:[%s2814_s10] sm:$0x33] }
 0x41c   : > { %v1890_v13 = vmul.f32 %v3005_v53, %v1883_v8  ;;  %v1885_v14 = vpop.f32.mrb[45].mxu0 }
 0x41d   : > { %v1891_v15 = vmul.f32 %v3009_v54, %v1885_v14  ;;  %v1887_v18 = vpop.f32.mrb[46].mxu0 }
 0x41e   : > { %v1892_v19 = vadd.f32 %v1890_v13, %v1822_v7  ;;  %v1888_v21 = vpop.f32.mrb[47].mxu0  ;;  %v2328_v13 = vcombine.high %v2326_v12, %v2326_v12 }
 0x41f   : > { %v1893_v23 = vadd.f32 %v1891_v15, %v1823_v10  ;;  %v1953_v25 = vpop.f32.mrb[28].mxu1 }
 0x420   : > { %v1960_v2 = vmul.f32 %v3003_v52, %v1953_v25  ;;  %v1955_v20 = vpop.f32.mrb[29].mxu1 }
 0x421   : > { %v1961_v26 = vmul.f32 %v3007_v0, %v1955_v20  ;;  %v1957_v28 = vpop.f32.mrb[30].mxu1 }
 0x422   : > { %v1962_v62 = vadd.f32 %v1960_v2, %v1892_v19  ;;  %v1958_v29 = vpop.f32.mrb[31].mxu1 }
 0x423   : > { %v2003_v17 = vpop.f32.mrb[48].mxu0  ;;  %v1963_v30 = vadd.f32 %v1961_v26, %v1893_v23 }
 0x424   : > { %v2010_v31 = vadd.f32 %v2003_v17, %v1962_v62  ;;  %v2005_v32 = vpop.f32.mrb[49].mxu0 }
 0x425   : > { %v2011_v27 = vadd.f32 %v2005_v32, %v1963_v30  ;;  %v2007_v16 = vpop.f32.mrb[50].mxu0 }
 0x426   : > { %v2008_v33 = vpop.f32.mrb[51].mxu0 }
 0x42b   : > { %v2083_v34 = vpop.f32.mrb[32].mxu1  ;;  %v2153_v36 = vpop.f32.mrb[52].mxu0 }
 0x42c   : > { %v2090_v37 = vmul.f32 %v3005_v53, %v2083_v34  ;;  %v2085_v24 = vpop.f32.mrb[33].mxu1  ;;  %v2160_v38 = vmul.f32 %v3003_v52, %v2153_v36  ;;  %v2155_v39 = vpop.f32.mrb[53].mxu0 }
 0x42d   : > { %v2091_v35 = vmul.f32 %v3009_v54, %v2085_v24  ;;  %v2161_v22 = vmul.f32 %v3007_v0, %v2155_v39  ;;  %v2087_v40 = vpop.f32.mrb[34].mxu1  ;;  %v2157_v41 = vpop.f32.mrb[54].mxu0 }
 0x42e   : > { %v2092_v42 = vadd.f32 %v2090_v37, %v2010_v31  ;;  %v2088_v43 = vpop.f32.mrb[35].mxu1  ;;  %v2158_v44 = vpop.f32.mrb[55].mxu0 }
 0x42f   : > { %v2093_v45 = vadd.f32 %v2091_v35, %v2011_v27 }
 0x430   : > { %v2162_v46 = vadd.f32 %v2160_v38, %v2092_v42 }
 0x431   : > { %v2163_v47 = vadd.f32 %v2161_v22, %v2093_v45 }
 0x433   : > { %v2291_v48 = vpop.f32.mrb[56].mxu0 }
 0x434   : > { %v2293_v49 = vpop.f32.mrb[57].mxu0  ;;  %v2298_v50 = vmul.f32 %v3005_v53, %v2291_v48 }
 0x435   : > { %v2295_v51 = vpop.f32.mrb[58].mxu0  ;;  %v2299_v52 = vmul.f32 %v3009_v54, %v2293_v49 }
 0x436   : > { %v2223_v55 = vpop.f32.mrb[36].mxu1  ;;  %v2296_v56 = vpop.f32.mrb[59].mxu0 }
 0x437   : > { %v2230_v57 = vadd.f32 %v2223_v55, %v2162_v46  ;;  %v2225_v58 = vpop.f32.mrb[37].mxu1 }
 0x438   : > { %v2231_v0 = vadd.f32 %v2225_v58, %v2163_v47  ;;  %v2227_v59 = vpop.f32.mrb[38].mxu1 }
 0x439   : > { %v2300_v1 = vadd.f32 %v2298_v50, %v2230_v57  ;;  %v2228_v60 = vpop.f32.mrb[39].mxu1 }
 0x43a   : > { %v2301_v63 = vadd.f32 %v2299_v52, %v2231_v0 }
 0x43b   : > { %v2308_v3 = vadd.f32 %v2306_v61, %v2300_v1 }
 0x43c   : > { %v2309_v4 = vadd.f32 %v2306_v61, %v2301_v63 }
 0x43d   : > { %v2310_v5 = vadd.f32 2.0, %v2308_v3  ;;  %v2334_v21 = vrot.slane %v2308_v3, 2 }
 0x43e   : > { %v2311_v6 = vadd.f32 2.0, %v2309_v4  ;;  %v2335_v25 = vrot.slane %v2309_v4, 2 }
 0x43f   : > { %v2569_v7 = vmul.f32 -1.442695, %v2310_v5 }
 0x440   : > { %v2570_v53 = vmul.f32 -1.442695, %v2311_v6 }
 0x441   : > { %2716 = vpow2.f32 %v2569_v7 }
 0x442   : > { %2718 = vpow2.f32 %v2570_v53 }
 0x44b   : > { %v2717_v9 = vpop.eup %2716 }
 0x44c   : > { %v2719_v54 = vpop.eup %2718  ;;  %v2318_v10 = vadd.f32 1.0, %v2717_v9 }
 0x44d   : > { %v2319_v11 = vadd.f32 1.0, %v2719_v54 }
 0x44e   : > { %2720 = vrcp.f32 %v2318_v10 }
 0x44f   : > { %2722 = vrcp.f32 %v2319_v11 }
 0x458   : > { %v2721_v8 = vpop.eup %2720 }
 0x459   : > { %v2723_v14 = vpop.eup %2722  ;;  %v2324_v15 = vadd.f32 0.0001, %v2721_v8 }
 0x45a   : > { %v2325_v18 = vadd.f32 0.0001, %v2723_v14 }
 0x45b   : > { %v2330_v19 = vmul.f32 %v2326_v12, %v2324_v15  ;;  %2724 = vlog2.f32 %v2324_v15 }
 0x45c   : > { %v2331_v23 = vmul.f32 %v2328_v13, %v2325_v18  ;;  %2726 = vlog2.f32 %v2325_v18 }
 0x45d   : > { %v2338_v2 = vadd.f32 %v2334_v21, %v2330_v19 }
 0x45e   : > { %v2339_v20 = vadd.f32 %v2335_v25, %v2331_v23 }
 0x460   : > { %v2342_v26 = vcombine.low %v2338_v2, %v2339_v20 }
 0x462   : > { %2344 = vst [vmem:[%s3273_s15] sm:$0x33] %v2342_v26 }
 0x465   : > { %v2725_v28 = vpop.eup %2724 }
 0x466   : > { %v2727_v62 = vpop.eup %2726  ;;  %v2348_v29 = vmul.f32 0.6931472, %v2725_v28 }
 0x467   : > { %v2350_v17 = vmul.f32 0.6931472, %v2727_v62 }
 0x468   : > { %v2352_v30 = vsel %vm2351_vm15, %v2348_v29, 0.0 }
 0x469   : > { %v2353_v31 = vsel %vm2351_vm15, %v2350_v17, 0.0 }
 0x46a   : > { %v2354_v32 = vadd.f32 %v2353_v31, %v2352_v30 }
 0x46c   : > { %2355 = vadd.xlane.f32.xlu0 %v2354_v32 }
 0x4f9   : > { %v2356_v27 = vpop.xlane.xlu0 %2355 }
 0x4fa   : > { %v2357_v16 = vrot.slane %v2356_v27, 4 }
 0x4fc   : > { %v2358_v33 = vadd.f32 %v2357_v16, %v2356_v27 }
 0x4fe   : > { %v2359_v34 = vrot.slane %v2358_v33, 2 }
 0x500   : > { %v2360_v36 = vadd.f32 %v2359_v34, %v2358_v33 }
 0x502   : > { %v2361_v37 = vrot.slane %v2360_v36, 1 }
 0x504   : > { %v2362_v24 = vadd.f32 %v2361_v37, %v2360_v36 }
 0x506   : > { %2631 = vpush %v2362_v24 }
 0x537   : > { %s2632_s17 = spop %2631 }
 0x538   : > { %v2364_v38 = vstv %s2632_s17 }
 0x539   : > { %2366 = vst.msk [vmem:[%s314_s16] sm:$0x1] %vm2365_vm0, %v2364_v38 }
 0x53a PF: > { %s19_s27 = sadd.s32 1, %s2734_s27  }
 0x53b   : > { %p16_p4 = scmp.ge.s32.totalorder %s19_s27, 4  }
 0x53d   :  { %18 = sbr.rel (!%p16_p4) target bundleno = 1 (0x1), region = 106 }

</bundles_post_ra>
